<compile_context>
chip_gen: v5e
topology: v5e:2x2
jax: 0.10.0
libtpu: 0.0.40
codegen_flags: <defaults>
</compile_context>

<pallas_src>
import functools
import math

import jax
import jax.numpy as jnp
from jax.experimental import pallas as pl
from jax.experimental.pallas import tpu as pltpu

_NEG = jnp.float32(-1e30)   # finite "-inf" for additive masks


# ----------------------------------------------------------------------------
# Fused decoder-layer kernel (one grid step == one batch element)
# ----------------------------------------------------------------------------
def _layernorm(z, g, b, eps):
    mu = jnp.mean(z, axis=-1, keepdims=True)
    var = jnp.mean((z - mu) * (z - mu), axis=-1, keepdims=True)
    return (z - mu) * jax.lax.rsqrt(var + eps) * g + b


def _softmax_rows(s):
    s = s - jnp.max(s, axis=-1, keepdims=True)
    p = jnp.exp(s)
    return p * pl.reciprocal(jnp.sum(p, axis=-1, keepdims=True), approx=True)


def _decoder_layer_kernel(
    # data
    x_ref, enc_ref, tgtmask_ref, padadd_ref,
    # self-attention params
    wqkv_sa_ref, bqkv_sa_ref, wo_sa_ref, bo_sa_ref, g_sa_ref, b_sa_ref,
    # cross-attention params
    wq_ca_ref, bq_ca_ref, wkv_ca_ref, bkv_ca_ref, wo_ca_ref, bo_ca_ref,
    g_ca_ref, b_ca_ref,
    # feed-forward params
    w1_ref, b1_ref, w2_ref, b2_ref, g_ff_ref, b_ff_ref,
    # outputs
    out_ref, attn_ref,
    # scratch
    headcat_ref,                       # (L, D) f32 VMEM: concatenated head outputs
    *, num_heads, scale, eps):
    f32 = jnp.float32
    bf16 = jnp.bfloat16

    x = x_ref[0].astype(f32)       # (L, D)
    enc = enc_ref[0].astype(f32)   # (S, D)
    L, D = x.shape
    H = num_heads
    Dh = D // H

    # ---------------- masked self-attention -------------------------------
    # fused QKV projection: single (L,D)@(D,3D) MXU pass, bf16 operands
    qkv = jnp.dot(x.astype(bf16), wqkv_sa_ref[...],
                  preferred_element_type=f32) + bqkv_sa_ref[...]
    # additive mask built in-kernel: causal [L,L] + key-padding row [1,L]
    mask = tgtmask_ref[...] + padadd_ref[0]

    for h in range(H):                             # H is small & static
        qh = qkv[:, h * Dh:(h + 1) * Dh].astype(bf16)
        kh = qkv[:, D + h * Dh:D + (h + 1) * Dh].astype(bf16)
        vh = qkv[:, 2 * D + h * Dh:2 * D + (h + 1) * Dh].astype(bf16)
        s = jax.lax.dot_general(qh, kh, (((1,), (1,)), ((), ())),
                                preferred_element_type=f32) * scale + mask
        p = _softmax_rows(s)
        oh = jnp.dot(p.astype(bf16), vh, preferred_element_type=f32)   # (L, Dh)
        headcat_ref[:, h * Dh:(h + 1) * Dh] = oh                        # lane offset h*Dh

    # ONE merged out-projection (L,D)@(D,D) instead of H K=Dh matmuls
    sa = jnp.dot(headcat_ref[...].astype(bf16), wo_sa_ref[...],
                 preferred_element_type=f32) + bo_sa_ref[...]
    x1 = _layernorm(x + sa, g_sa_ref[...], b_sa_ref[...], eps)

    # ---------------- cross-attention over encoder outputs (no mask) ------
    q = jnp.dot(x1.astype(bf16), wq_ca_ref[...],
                preferred_element_type=f32) + bq_ca_ref[...]
    kv = jnp.dot(enc.astype(bf16), wkv_ca_ref[...],
                 preferred_element_type=f32) + bkv_ca_ref[...]
    for h in range(H):
        qh = q[:, h * Dh:(h + 1) * Dh].astype(bf16)
        kh = kv[:, h * Dh:(h + 1) * Dh].astype(bf16)
        vh = kv[:, D + h * Dh:D + (h + 1) * Dh].astype(bf16)
        s = jax.lax.dot_general(qh, kh, (((1,), (1,)), ((), ())),
                                preferred_element_type=f32) * scale
        p = _softmax_rows(s)
        attn_ref[0, h, :, :] = p.astype(attn_ref.dtype)   # per-head attention weights
        oh = jnp.dot(p.astype(bf16), vh, preferred_element_type=f32)
        headcat_ref[:, h * Dh:(h + 1) * Dh] = oh

    ca = jnp.dot(headcat_ref[...].astype(bf16), wo_ca_ref[...],
                 preferred_element_type=f32) + bo_ca_ref[...]
    x2 = _layernorm(x1 + ca, g_ca_ref[...], b_ca_ref[...], eps)

    # ---------------- feed-forward -----------------------------------------
    h1 = jnp.dot(x2.astype(bf16), w1_ref[...],
                 preferred_element_type=f32) + b1_ref[...]
    h1 = jnp.maximum(h1, 0.0)
    ff = jnp.dot(h1.astype(bf16), w2_ref[...],
                 preferred_element_type=f32) + b2_ref[...]
    out = _layernorm(x2 + ff, g_ff_ref[...], b_ff_ref[...], eps)
    out_ref[0, :, :] = out.astype(out_ref.dtype)


# ----------------------------------------------------------------------------
# Forward wrapper (single pallas_call, jitted)
# ----------------------------------------------------------------------------
@functools.partial(jax.jit, static_argnames=("num_heads",))
def decoder_layer_forward(kp, dec_inputs, enc_outputs, tgt_mask, tgt_pad_mask,
                          *, num_heads):
    L, B, D = dec_inputs.shape
    S = enc_outputs.shape[0]
    H = num_heads
    Dh = D // H
    F = kp["w1"].shape[1]
    dt = dec_inputs.dtype

    # one-time layout glue (folded by XLA under jit)
    x_bf = jnp.transpose(dec_inputs, (1, 0, 2))      # [B, L, D]
    enc_bf = jnp.transpose(enc_outputs, (1, 0, 2))   # [B, S, D]
    pad_add = jnp.where(tgt_pad_mask, _NEG, jnp.float32(0.0))[:, None, :]  # [B,1,L]
    # clamp any -inf coming from PyTorch-style masks to a large finite negative
    tgt_mask_f = jnp.maximum(tgt_mask.astype(jnp.float32), _NEG)           # [L, L]

    kern = functools.partial(_decoder_layer_kernel, num_heads=H,
                             scale=1.0 / math.sqrt(Dh), eps=1e-5)

    def full(shape):
        n = len(shape)
        return pl.BlockSpec(shape, lambda b, n=n: (0,) * n)

    def per_b(d1, d2):
        return pl.BlockSpec((1, d1, d2), lambda b: (b, 0, 0))

    in_specs = [
        per_b(L, D),                 # x (batch-first)
        per_b(S, D),                 # enc (batch-first)
        full((L, L)),                # causal additive mask (shared)
        per_b(1, L),                 # key-padding additive mask
        # self-attention
        full((D, 3 * D)), full((1, 3 * D)), full((D, D)), full((1, D)),
        full((1, D)), full((1, D)),
        # cross-attention
        full((D, D)), full((1, D)), full((D, 2 * D)), full((1, 2 * D)),
        full((D, D)), full((1, D)), full((1, D)), full((1, D)),
        # feed-forward
        full((D, F)), full((1, F)), full((F, D)), full((1, D)),
        full((1, D)), full((1, D)),
    ]
    out_specs = (
        pl.BlockSpec((1, L, D), lambda b: (b, 0, 0)),
        pl.BlockSpec((1, H, L, S), lambda b: (b, 0, 0, 0)),
    )

    out_bf, attns = pl.pallas_call(
        kern,
        out_shape=(jax.ShapeDtypeStruct((B, L, D), dt),
                   jax.ShapeDtypeStruct((B, H, L, S), dt)),
        grid=(B,),
        in_specs=in_specs,
        out_specs=out_specs,
        scratch_shapes=[pltpu.VMEM((L, D), jnp.float32)],
        compiler_params=pltpu.CompilerParams(
            dimension_semantics=("parallel",),
            vmem_limit_bytes=64 * 1024 * 1024),
    )(
        x_bf, enc_bf, tgt_mask_f, pad_add,
        kp["wqkv_sa"], kp["bqkv_sa"], kp["wo_sa"], kp["bo_sa"], kp["g_sa"], kp["b_sa"],
        kp["wq_ca"], kp["bq_ca"], kp["wkv_ca"], kp["bkv_ca"], kp["wo_ca"], kp["bo_ca"],
        kp["g_ca"], kp["b_ca"],
        kp["w1"], kp["b1"], kp["w2"], kp["b2"], kp["g_ff"], kp["b_ff"],
    )
    return jnp.transpose(out_bf, (1, 0, 2)), attns


# ----------------------------------------------------------------------------
# Parameters: PyTorch-layout init + one-time kernel-layout preparation
# ----------------------------------------------------------------------------
def init_params(key, d_model, num_heads, feedforward_dim):
    ks = jax.random.split(key, 6)

    def mha_params(k):
        k1, k2 = jax.random.split(k)
        return dict(
            in_proj_w=0.02 * jax.random.normal(k1, (3 * d_model, d_model), jnp.float32),
            in_proj_b=jnp.zeros((3 * d_model,), jnp.float32),
            out_w=0.02 * jax.random.normal(k2, (d_model, d_model), jnp.float32),
            out_b=jnp.zeros((d_model,), jnp.float32),
        )

    return dict(
        self_attn=mha_params(ks[0]),
        cross_attn=mha_params(ks[1]),
        sa_norm_g=jnp.ones((d_model,), jnp.float32),
        sa_norm_b=jnp.zeros((d_model,), jnp.float32),
        ca_norm_g=jnp.ones((d_model,), jnp.float32),
        ca_norm_b=jnp.zeros((d_model,), jnp.float32),
        ff_w1=0.02 * jax.random.normal(ks[2], (feedforward_dim, d_model), jnp.float32),
        ff_b1=jnp.zeros((feedforward_dim,), jnp.float32),
        ff_w2=0.02 * jax.random.normal(ks[3], (d_model, feedforward_dim), jnp.float32),
        ff_b2=jnp.zeros((d_model,), jnp.float32),
        ff_norm_g=jnp.ones((d_model,), jnp.float32),
        ff_norm_b=jnp.zeros((d_model,), jnp.float32),
    )


def prepare_params(p, d_model):
    """Transpose/cast PyTorch-layout weights ONCE into kernel-ready layouts.

    Matmul operand weights are stored bf16 (MXU-friendly, half VMEM);
    biases / LayerNorm params stay f32 (elementwise path stays f32).
    """
    D = d_model
    bf16 = jnp.bfloat16
    sa, ca = p["self_attn"], p["cross_attn"]
    r = lambda v: v.reshape(1, -1).astype(jnp.float32)
    return dict(
        wqkv_sa=sa["in_proj_w"].T.astype(bf16),       # [D, 3D]
        bqkv_sa=r(sa["in_proj_b"]),                   # [1, 3D]
        wo_sa=sa["out_w"].T.astype(bf16), bo_sa=r(sa["out_b"]),
        g_sa=r(p["sa_norm_g"]), b_sa=r(p["sa_norm_b"]),
        wq_ca=ca["in_proj_w"][:D].T.astype(bf16),     # [D, D]
        bq_ca=r(ca["in_proj_b"][:D]),
        wkv_ca=ca["in_proj_w"][D:].T.astype(bf16),    # [D, 2D]  (cols: K then V)
        bkv_ca=r(ca["in_proj_b"][D:]),
        wo_ca=ca["out_w"].T.astype(bf16), bo_ca=r(ca["out_b"]),
        g_ca=r(p["ca_norm_g"]), b_ca=r(p["ca_norm_b"]),
        w1=p["ff_w1"].T.astype(bf16), b1=r(p["ff_b1"]),   # [D, F]
        w2=p["ff_w2"].T.astype(bf16), b2=r(p["ff_b2"]),   # [F, D]
        g_ff=r(p["ff_norm_g"]), b_ff=r(p["ff_norm_b"]),
    )


# ----------------------------------------------------------------------------
# Pure-JAX reference of the PyTorch eval-mode forward (for the self-check)
# ----------------------------------------------------------------------------
def _ref_decoder_layer(params, dec_inputs, enc_outputs, tgt_mask, tgt_pad_mask, H):
    prec = jax.lax.Precision.HIGHEST
    mm = functools.partial(jnp.matmul, precision=prec)

    def mha(q_in, k_in, v_in, p, attn_mask=None, key_pad=None):
        Lq, B, D = q_in.shape
        Lk = k_in.shape[0]
        Dh = D // H
        w, bias = p["in_proj_w"], p["in_proj_b"]
        q = mm(q_in, w[:D].T) + bias[:D]
        k = mm(k_in, w[D:2 * D].T) + bias[D:2 * D]
        v = mm(v_in, w[2 * D:].T) + bias[2 * D:]
        q = q.reshape(Lq, B, H, Dh).transpose(1, 2, 0, 3)
        k = k.reshape(Lk, B, H, Dh).transpose(1, 2, 0, 3)
        v = v.reshape(Lk, B, H, Dh).transpose(1, 2, 0, 3)
        s = jnp.einsum("bhqd,bhkd->bhqk", q, k, precision=prec) / math.sqrt(Dh)
        if attn_mask is not None:
            s = s + attn_mask[None, None]
        if key_pad is not None:
            s = jnp.where(key_pad[:, None, None, :], -jnp.inf, s)
        w_attn = jax.nn.softmax(s, axis=-1)
        o = jnp.einsum("bhqk,bhkd->bhqd", w_attn, v, precision=prec)
        o = o.transpose(2, 0, 1, 3).reshape(Lq, B, D)
        return mm(o, p["out_w"].T) + p["out_b"], w_attn

    def ln(z, g, b):
        mu = z.mean(-1, keepdims=True)
        var = ((z - mu) ** 2).mean(-1, keepdims=True)
        return (z - mu) / jnp.sqrt(var + 1e-5) * g + b

    sa, _ = mha(dec_inputs, dec_inputs, dec_inputs, params["self_attn"],
                attn_mask=tgt_mask, key_pad=tgt_pad_mask)
    x = ln(dec_inputs + sa, params["sa_norm_g"], params["sa_norm_b"])
    ca, attns = mha(x, enc_outputs, enc_outputs, params["cross_attn"])
    x = ln(x + ca, params["ca_norm_g"], params["ca_norm_b"])
    ff = mm(jnp.maximum(mm(x, params["ff_w1"].T) + params["ff_b1"], 0.0),
            params["ff_w2"].T) + params["ff_b2"]
    x = ln(x + ff, params["ff_norm_g"], params["ff_norm_b"])
    return x, attns


if __name__ == "__main__":
    d_model, num_heads, feedforward_dim = 32, 4, 64
    max_len, batch, enc_len = 8, 2, 16   # enc_len stands in for encode_size^2

    root = jax.random.PRNGKey(0)
    k_in, k_enc, k_par = jax.random.split(root, 3)

    dec_inputs = jax.random.normal(k_in, (max_len, batch, d_model), jnp.float32)
    enc_outputs = jax.random.normal(k_enc, (enc_len, batch, d_model), jnp.float32)

    # standard PyTorch generate_square_subsequent_mask (additive, -inf above diag)
    tgt_mask = jnp.where(jnp.triu(jnp.ones((max_len, max_len), bool), k=1),
                         -jnp.inf, 0.0).astype(jnp.float32)
    # pad mask: last two positions of every sequence are padding
    tgt_pad_mask = jnp.zeros((batch, max_len), bool).at[:, -2:].set(True)

    params = init_params(k_par, d_model, num_heads, feedforward_dim)
    kparams = prepare_params(params, d_model)        # pre-transposed / bf16 once

    out, attns = decoder_layer_forward(kparams, dec_inputs, enc_outputs,
                                       tgt_mask, tgt_pad_mask,
                                       num_heads=num_heads)
    jax.block_until_ready((out, attns))

    assert out.shape == (max_len, batch, d_model)
    assert attns.shape == (batch, num_heads, max_len, enc_len)
    assert bool(jnp.all(jnp.isfinite(out))) and bool(jnp.all(jnp.isfinite(attns)))

    # correctness check vs. pure-JAX reference of the PyTorch eval-mode forward
    # (tolerances account for bf16 matmul operands in the kernel)
    ref_out, ref_attns = _ref_decoder_layer(params, dec_inputs, enc_outputs,
                                            tgt_mask, tgt_pad_mask, num_heads)
    assert bool(jnp.allclose(out, ref_out, atol=1e-2, rtol=1e-2))
    assert bool(jnp.allclose(attns, ref_attns, atol=5e-3, rtol=5e-3))

    print("KERNEL_OK")
</pallas_src>

<mosaic_0001>
module attributes {stable_mosaic.version = 11 : i64} {
  func.func @_decoder_layer_kernel(%arg0: i32, %arg1: memref<1x8x32xf32, #tpu.memory_space<vmem>>, %arg2: memref<1x16x32xf32, #tpu.memory_space<vmem>>, %arg3: memref<8x8xf32, #tpu.memory_space<vmem>>, %arg4: memref<1x1x8xf32, #tpu.memory_space<vmem>>, %arg5: memref<32x96xbf16, #tpu.memory_space<vmem>>, %arg6: memref<1x96xf32, #tpu.memory_space<vmem>>, %arg7: memref<32x32xbf16, #tpu.memory_space<vmem>>, %arg8: memref<1x32xf32, #tpu.memory_space<vmem>>, %arg9: memref<1x32xf32, #tpu.memory_space<vmem>>, %arg10: memref<1x32xf32, #tpu.memory_space<vmem>>, %arg11: memref<32x32xbf16, #tpu.memory_space<vmem>>, %arg12: memref<1x32xf32, #tpu.memory_space<vmem>>, %arg13: memref<32x64xbf16, #tpu.memory_space<vmem>>, %arg14: memref<1x64xf32, #tpu.memory_space<vmem>>, %arg15: memref<32x32xbf16, #tpu.memory_space<vmem>>, %arg16: memref<1x32xf32, #tpu.memory_space<vmem>>, %arg17: memref<1x32xf32, #tpu.memory_space<vmem>>, %arg18: memref<1x32xf32, #tpu.memory_space<vmem>>, %arg19: memref<32x64xbf16, #tpu.memory_space<vmem>>, %arg20: memref<1x64xf32, #tpu.memory_space<vmem>>, %arg21: memref<64x32xbf16, #tpu.memory_space<vmem>>, %arg22: memref<1x32xf32, #tpu.memory_space<vmem>>, %arg23: memref<1x32xf32, #tpu.memory_space<vmem>>, %arg24: memref<1x32xf32, #tpu.memory_space<vmem>>, %arg25: memref<1x8x32xf32, #tpu.memory_space<vmem>>, %arg26: memref<1x4x8x16xf32, #tpu.memory_space<vmem>>, %arg27: memref<8x32xf32, #tpu.memory_space<vmem>>) attributes {dimension_semantics = [#tpu.dimension_semantics<parallel>], iteration_bounds = array<i64: 2>, scalar_prefetch = 0 : i64, scratch_operands = 1 : i64, tpu.core_type = #tpu.core_type<tc>, window_params = [{transform_indices = @transform_0, window_bounds = array<i64: 1, 8, 32>}, {transform_indices = @transform_1, window_bounds = array<i64: 1, 16, 32>}, {pipeline_mode = #tpu.pipeline_mode<synchronous>, transform_indices = @transform_2, window_bounds = array<i64: 8, 8>}, {transform_indices = @transform_3, window_bounds = array<i64: 1, 1, 8>}, {pipeline_mode = #tpu.pipeline_mode<synchronous>, transform_indices = @transform_4, window_bounds = array<i64: 32, 96>}, {pipeline_mode = #tpu.pipeline_mode<synchronous>, transform_indices = @transform_5, window_bounds = array<i64: 1, 96>}, {pipeline_mode = #tpu.pipeline_mode<synchronous>, transform_indices = @transform_6, window_bounds = array<i64: 32, 32>}, {pipeline_mode = #tpu.pipeline_mode<synchronous>, transform_indices = @transform_7, window_bounds = array<i64: 1, 32>}, {pipeline_mode = #tpu.pipeline_mode<synchronous>, transform_indices = @transform_8, window_bounds = array<i64: 1, 32>}, {pipeline_mode = #tpu.pipeline_mode<synchronous>, transform_indices = @transform_9, window_bounds = array<i64: 1, 32>}, {pipeline_mode = #tpu.pipeline_mode<synchronous>, transform_indices = @transform_10, window_bounds = array<i64: 32, 32>}, {pipeline_mode = #tpu.pipeline_mode<synchronous>, transform_indices = @transform_11, window_bounds = array<i64: 1, 32>}, {pipeline_mode = #tpu.pipeline_mode<synchronous>, transform_indices = @transform_12, window_bounds = array<i64: 32, 64>}, {pipeline_mode = #tpu.pipeline_mode<synchronous>, transform_indices = @transform_13, window_bounds = array<i64: 1, 64>}, {pipeline_mode = #tpu.pipeline_mode<synchronous>, transform_indices = @transform_14, window_bounds = array<i64: 32, 32>}, {pipeline_mode = #tpu.pipeline_mode<synchronous>, transform_indices = @transform_15, window_bounds = array<i64: 1, 32>}, {pipeline_mode = #tpu.pipeline_mode<synchronous>, transform_indices = @transform_16, window_bounds = array<i64: 1, 32>}, {pipeline_mode = #tpu.pipeline_mode<synchronous>, transform_indices = @transform_17, window_bounds = array<i64: 1, 32>}, {pipeline_mode = #tpu.pipeline_mode<synchronous>, transform_indices = @transform_18, window_bounds = array<i64: 32, 64>}, {pipeline_mode = #tpu.pipeline_mode<synchronous>, transform_indices = @transform_19, window_bounds = array<i64: 1, 64>}, {pipeline_mode = #tpu.pipeline_mode<synchronous>, transform_indices = @transform_20, window_bounds = array<i64: 64, 32>}, {pipeline_mode = #tpu.pipeline_mode<synchronous>, transform_indices = @transform_21, window_bounds = array<i64: 1, 32>}, {pipeline_mode = #tpu.pipeline_mode<synchronous>, transform_indices = @transform_22, window_bounds = array<i64: 1, 32>}, {pipeline_mode = #tpu.pipeline_mode<synchronous>, transform_indices = @transform_23, window_bounds = array<i64: 1, 32>}, {transform_indices = @transform_24, window_bounds = array<i64: 1, 8, 32>}, {transform_indices = @transform_25, window_bounds = array<i64: 1, 4, 8, 16>}]} {
    %c0 = arith.constant 0 : index
    %c0_0 = arith.constant 0 : index
    %c0_1 = arith.constant 0 : index
    %0 = vector.load %arg1[%c0, %c0_0, %c0_1] : memref<1x8x32xf32, #tpu.memory_space<vmem>>, vector<1x8x32xf32>
    %1 = vector.shape_cast %0 : vector<1x8x32xf32> to vector<8x32xf32>
    %c0_2 = arith.constant 0 : index
    %c0_3 = arith.constant 0 : index
    %c0_4 = arith.constant 0 : index
    %2 = vector.load %arg2[%c0_2, %c0_3, %c0_4] : memref<1x16x32xf32, #tpu.memory_space<vmem>>, vector<1x16x32xf32>
    %3 = vector.shape_cast %2 : vector<1x16x32xf32> to vector<16x32xf32>
    %4 = arith.truncf %1 : vector<8x32xf32> to vector<8x32xbf16>
    %c0_5 = arith.constant 0 : index
    %c0_6 = arith.constant 0 : index
    %5 = vector.load %arg5[%c0_5, %c0_6] : memref<32x96xbf16, #tpu.memory_space<vmem>>, vector<32x96xbf16>
    %cst = arith.constant dense<0.000000e+00> : vector<8x96xf32>
    %6 = tpu.matmul %4, %5, %cst {dimension_numbers = #tpu.dot_dimension_numbers<[1], [0], [0], [1], [0, 0, 1, 1], [], []>} : vector<8x32xbf16>, vector<32x96xbf16>, vector<8x96xf32> -> vector<8x96xf32>
    %c0_7 = arith.constant 0 : index
    %c0_8 = arith.constant 0 : index
    %7 = vector.load %arg6[%c0_7, %c0_8] : memref<1x96xf32, #tpu.memory_space<vmem>>, vector<1x96xf32>
    %8 = vector.broadcast %7 : vector<1x96xf32> to vector<8x96xf32>
    %9 = arith.addf %6, %8 : vector<8x96xf32>
    %c0_9 = arith.constant 0 : index
    %c0_10 = arith.constant 0 : index
    %10 = vector.load %arg3[%c0_9, %c0_10] : memref<8x8xf32, #tpu.memory_space<vmem>>, vector<8x8xf32>
    %c0_11 = arith.constant 0 : index
    %c0_12 = arith.constant 0 : index
    %c0_13 = arith.constant 0 : index
    %11 = vector.load %arg4[%c0_11, %c0_12, %c0_13] : memref<1x1x8xf32, #tpu.memory_space<vmem>>, vector<1x1x8xf32>
    %12 = vector.shape_cast %11 : vector<1x1x8xf32> to vector<1x8xf32>
    %13 = vector.broadcast %12 : vector<1x8xf32> to vector<8x8xf32>
    %14 = arith.addf %10, %13 : vector<8x8xf32>
    %15 = vector.extract_strided_slice %9 {offsets = [0, 0], sizes = [8, 8], strides = [1, 1]} : vector<8x96xf32> to vector<8x8xf32>
    %16 = arith.truncf %15 : vector<8x8xf32> to vector<8x8xbf16>
    %17 = vector.extract_strided_slice %9 {offsets = [0, 32], sizes = [8, 8], strides = [1, 1]} : vector<8x96xf32> to vector<8x8xf32>
    %18 = arith.truncf %17 : vector<8x8xf32> to vector<8x8xbf16>
    %19 = vector.extract_strided_slice %9 {offsets = [0, 64], sizes = [8, 8], strides = [1, 1]} : vector<8x96xf32> to vector<8x8xf32>
    %20 = arith.truncf %19 : vector<8x8xf32> to vector<8x8xbf16>
    %cst_14 = arith.constant dense<0.000000e+00> : vector<8x8xf32>
    %21 = tpu.matmul %16, %18, %cst_14 {dimension_numbers = #tpu.dot_dimension_numbers<[1], [1], [0], [0], [0, 0, 1, 0], [], []>} : vector<8x8xbf16>, vector<8x8xbf16>, vector<8x8xf32> -> vector<8x8xf32>
    %cst_15 = arith.constant 0.353553385 : f32
    %22 = vector.broadcast %cst_15 : f32 to vector<8x8xf32>
    %23 = arith.mulf %21, %22 : vector<8x8xf32>
    %24 = arith.addf %23, %14 : vector<8x8xf32>
    %cst_16 = arith.constant dense<0xFF800000> : vector<8xf32>
    %25 = vector.multi_reduction <maximumf>, %24, %cst_16 [1] : vector<8x8xf32> to vector<8xf32>
    %26 = vector.shape_cast %25 : vector<8xf32> to vector<8x1xf32>
    %27 = vector.broadcast %26 : vector<8x1xf32> to vector<8x8xf32>
    %28 = arith.subf %24, %27 : vector<8x8xf32>
    %29 = math.exp %28 : vector<8x8xf32>
    %cst_17 = arith.constant dense<0.000000e+00> : vector<8xf32>
    %30 = vector.multi_reduction <add>, %29, %cst_17 [1] : vector<8x8xf32> to vector<8xf32>
    %31 = vector.shape_cast %30 : vector<8xf32> to vector<8x1xf32>
    %32 = tpu.reciprocal %31 {approx = true} : vector<8x1xf32> -> vector<8x1xf32>
    %33 = vector.broadcast %32 : vector<8x1xf32> to vector<8x8xf32>
    %34 = arith.mulf %29, %33 : vector<8x8xf32>
    %35 = arith.truncf %34 : vector<8x8xf32> to vector<8x8xbf16>
    %cst_18 = arith.constant dense<0.000000e+00> : vector<8x8xf32>
    %36 = tpu.matmul %35, %20, %cst_18 {dimension_numbers = #tpu.dot_dimension_numbers<[1], [0], [0], [1], [0, 0, 1, 1], [], []>} : vector<8x8xbf16>, vector<8x8xbf16>, vector<8x8xf32> -> vector<8x8xf32>
    %c0_19 = arith.constant 0 : index
    %c0_20 = arith.constant 0 : index
    %37 = vector.load %arg27[%c0_19, %c0_20] : memref<8x32xf32, #tpu.memory_space<vmem>>, vector<8x8xf32>
    tpu.vector_store %arg27[%c0_19, %c0_20], %36 {strides = array<i32>} : memref<8x32xf32, #tpu.memory_space<vmem>>, vector<8x8xf32>,
    %38 = vector.extract_strided_slice %9 {offsets = [0, 8], sizes = [8, 8], strides = [1, 1]} : vector<8x96xf32> to vector<8x8xf32>
    %39 = arith.truncf %38 : vector<8x8xf32> to vector<8x8xbf16>
    %40 = vector.extract_strided_slice %9 {offsets = [0, 40], sizes = [8, 8], strides = [1, 1]} : vector<8x96xf32> to vector<8x8xf32>
    %41 = arith.truncf %40 : vector<8x8xf32> to vector<8x8xbf16>
    %42 = vector.extract_strided_slice %9 {offsets = [0, 72], sizes = [8, 8], strides = [1, 1]} : vector<8x96xf32> to vector<8x8xf32>
    %43 = arith.truncf %42 : vector<8x8xf32> to vector<8x8xbf16>
    %cst_21 = arith.constant dense<0.000000e+00> : vector<8x8xf32>
    %44 = tpu.matmul %39, %41, %cst_21 {dimension_numbers = #tpu.dot_dimension_numbers<[1], [1], [0], [0], [0, 0, 1, 0], [], []>} : vector<8x8xbf16>, vector<8x8xbf16>, vector<8x8xf32> -> vector<8x8xf32>
    %cst_22 = arith.constant 0.353553385 : f32
    %45 = vector.broadcast %cst_22 : f32 to vector<8x8xf32>
    %46 = arith.mulf %44, %45 : vector<8x8xf32>
    %47 = arith.addf %46, %14 : vector<8x8xf32>
    %cst_23 = arith.constant dense<0xFF800000> : vector<8xf32>
    %48 = vector.multi_reduction <maximumf>, %47, %cst_23 [1] : vector<8x8xf32> to vector<8xf32>
    %49 = vector.shape_cast %48 : vector<8xf32> to vector<8x1xf32>
    %50 = vector.broadcast %49 : vector<8x1xf32> to vector<8x8xf32>
    %51 = arith.subf %47, %50 : vector<8x8xf32>
    %52 = math.exp %51 : vector<8x8xf32>
    %cst_24 = arith.constant dense<0.000000e+00> : vector<8xf32>
    %53 = vector.multi_reduction <add>, %52, %cst_24 [1] : vector<8x8xf32> to vector<8xf32>
    %54 = vector.shape_cast %53 : vector<8xf32> to vector<8x1xf32>
    %55 = tpu.reciprocal %54 {approx = true} : vector<8x1xf32> -> vector<8x1xf32>
    %56 = vector.broadcast %55 : vector<8x1xf32> to vector<8x8xf32>
    %57 = arith.mulf %52, %56 : vector<8x8xf32>
    %58 = arith.truncf %57 : vector<8x8xf32> to vector<8x8xbf16>
    %cst_25 = arith.constant dense<0.000000e+00> : vector<8x8xf32>
    %59 = tpu.matmul %58, %43, %cst_25 {dimension_numbers = #tpu.dot_dimension_numbers<[1], [0], [0], [1], [0, 0, 1, 1], [], []>} : vector<8x8xbf16>, vector<8x8xbf16>, vector<8x8xf32> -> vector<8x8xf32>
    %c0_26 = arith.constant 0 : index
    %c8 = arith.constant 8 : index
    %60 = vector.load %arg27[%c0_26, %c8] : memref<8x32xf32, #tpu.memory_space<vmem>>, vector<8x8xf32>
    tpu.vector_store %arg27[%c0_26, %c8], %59 {strides = array<i32>} : memref<8x32xf32, #tpu.memory_space<vmem>>, vector<8x8xf32>,
    %61 = vector.extract_strided_slice %9 {offsets = [0, 16], sizes = [8, 8], strides = [1, 1]} : vector<8x96xf32> to vector<8x8xf32>
    %62 = arith.truncf %61 : vector<8x8xf32> to vector<8x8xbf16>
    %63 = vector.extract_strided_slice %9 {offsets = [0, 48], sizes = [8, 8], strides = [1, 1]} : vector<8x96xf32> to vector<8x8xf32>
    %64 = arith.truncf %63 : vector<8x8xf32> to vector<8x8xbf16>
    %65 = vector.extract_strided_slice %9 {offsets = [0, 80], sizes = [8, 8], strides = [1, 1]} : vector<8x96xf32> to vector<8x8xf32>
    %66 = arith.truncf %65 : vector<8x8xf32> to vector<8x8xbf16>
    %cst_27 = arith.constant dense<0.000000e+00> : vector<8x8xf32>
    %67 = tpu.matmul %62, %64, %cst_27 {dimension_numbers = #tpu.dot_dimension_numbers<[1], [1], [0], [0], [0, 0, 1, 0], [], []>} : vector<8x8xbf16>, vector<8x8xbf16>, vector<8x8xf32> -> vector<8x8xf32>
    %cst_28 = arith.constant 0.353553385 : f32
    %68 = vector.broadcast %cst_28 : f32 to vector<8x8xf32>
    %69 = arith.mulf %67, %68 : vector<8x8xf32>
    %70 = arith.addf %69, %14 : vector<8x8xf32>
    %cst_29 = arith.constant dense<0xFF800000> : vector<8xf32>
    %71 = vector.multi_reduction <maximumf>, %70, %cst_29 [1] : vector<8x8xf32> to vector<8xf32>
    %72 = vector.shape_cast %71 : vector<8xf32> to vector<8x1xf32>
    %73 = vector.broadcast %72 : vector<8x1xf32> to vector<8x8xf32>
    %74 = arith.subf %70, %73 : vector<8x8xf32>
    %75 = math.exp %74 : vector<8x8xf32>
    %cst_30 = arith.constant dense<0.000000e+00> : vector<8xf32>
    %76 = vector.multi_reduction <add>, %75, %cst_30 [1] : vector<8x8xf32> to vector<8xf32>
    %77 = vector.shape_cast %76 : vector<8xf32> to vector<8x1xf32>
    %78 = tpu.reciprocal %77 {approx = true} : vector<8x1xf32> -> vector<8x1xf32>
    %79 = vector.broadcast %78 : vector<8x1xf32> to vector<8x8xf32>
    %80 = arith.mulf %75, %79 : vector<8x8xf32>
    %81 = arith.truncf %80 : vector<8x8xf32> to vector<8x8xbf16>
    %cst_31 = arith.constant dense<0.000000e+00> : vector<8x8xf32>
    %82 = tpu.matmul %81, %66, %cst_31 {dimension_numbers = #tpu.dot_dimension_numbers<[1], [0], [0], [1], [0, 0, 1, 1], [], []>} : vector<8x8xbf16>, vector<8x8xbf16>, vector<8x8xf32> -> vector<8x8xf32>
    %c0_32 = arith.constant 0 : index
    %c16 = arith.constant 16 : index
    %83 = vector.load %arg27[%c0_32, %c16] : memref<8x32xf32, #tpu.memory_space<vmem>>, vector<8x8xf32>
    tpu.vector_store %arg27[%c0_32, %c16], %82 {strides = array<i32>} : memref<8x32xf32, #tpu.memory_space<vmem>>, vector<8x8xf32>,
    %84 = vector.extract_strided_slice %9 {offsets = [0, 24], sizes = [8, 8], strides = [1, 1]} : vector<8x96xf32> to vector<8x8xf32>
    %85 = arith.truncf %84 : vector<8x8xf32> to vector<8x8xbf16>
    %86 = vector.extract_strided_slice %9 {offsets = [0, 56], sizes = [8, 8], strides = [1, 1]} : vector<8x96xf32> to vector<8x8xf32>
    %87 = arith.truncf %86 : vector<8x8xf32> to vector<8x8xbf16>
    %88 = vector.extract_strided_slice %9 {offsets = [0, 88], sizes = [8, 8], strides = [1, 1]} : vector<8x96xf32> to vector<8x8xf32>
    %89 = arith.truncf %88 : vector<8x8xf32> to vector<8x8xbf16>
    %cst_33 = arith.constant dense<0.000000e+00> : vector<8x8xf32>
    %90 = tpu.matmul %85, %87, %cst_33 {dimension_numbers = #tpu.dot_dimension_numbers<[1], [1], [0], [0], [0, 0, 1, 0], [], []>} : vector<8x8xbf16>, vector<8x8xbf16>, vector<8x8xf32> -> vector<8x8xf32>
    %cst_34 = arith.constant 0.353553385 : f32
    %91 = vector.broadcast %cst_34 : f32 to vector<8x8xf32>
    %92 = arith.mulf %90, %91 : vector<8x8xf32>
    %93 = arith.addf %92, %14 : vector<8x8xf32>
    %cst_35 = arith.constant dense<0xFF800000> : vector<8xf32>
    %94 = vector.multi_reduction <maximumf>, %93, %cst_35 [1] : vector<8x8xf32> to vector<8xf32>
    %95 = vector.shape_cast %94 : vector<8xf32> to vector<8x1xf32>
    %96 = vector.broadcast %95 : vector<8x1xf32> to vector<8x8xf32>
    %97 = arith.subf %93, %96 : vector<8x8xf32>
    %98 = math.exp %97 : vector<8x8xf32>
    %cst_36 = arith.constant dense<0.000000e+00> : vector<8xf32>
    %99 = vector.multi_reduction <add>, %98, %cst_36 [1] : vector<8x8xf32> to vector<8xf32>
    %100 = vector.shape_cast %99 : vector<8xf32> to vector<8x1xf32>
    %101 = tpu.reciprocal %100 {approx = true} : vector<8x1xf32> -> vector<8x1xf32>
    %102 = vector.broadcast %101 : vector<8x1xf32> to vector<8x8xf32>
    %103 = arith.mulf %98, %102 : vector<8x8xf32>
    %104 = arith.truncf %103 : vector<8x8xf32> to vector<8x8xbf16>
    %cst_37 = arith.constant dense<0.000000e+00> : vector<8x8xf32>
    %105 = tpu.matmul %104, %89, %cst_37 {dimension_numbers = #tpu.dot_dimension_numbers<[1], [0], [0], [1], [0, 0, 1, 1], [], []>} : vector<8x8xbf16>, vector<8x8xbf16>, vector<8x8xf32> -> vector<8x8xf32>
    %c0_38 = arith.constant 0 : index
    %c24 = arith.constant 24 : index
    %106 = vector.load %arg27[%c0_38, %c24] : memref<8x32xf32, #tpu.memory_space<vmem>>, vector<8x8xf32>
    tpu.vector_store %arg27[%c0_38, %c24], %105 {strides = array<i32>} : memref<8x32xf32, #tpu.memory_space<vmem>>, vector<8x8xf32>,
    %c0_39 = arith.constant 0 : index
    %c0_40 = arith.constant 0 : index
    %107 = vector.load %arg27[%c0_39, %c0_40] : memref<8x32xf32, #tpu.memory_space<vmem>>, vector<8x32xf32>
    %108 = arith.truncf %107 : vector<8x32xf32> to vector<8x32xbf16>
    %c0_41 = arith.constant 0 : index
    %c0_42 = arith.constant 0 : index
    %109 = vector.load %arg7[%c0_41, %c0_42] : memref<32x32xbf16, #tpu.memory_space<vmem>>, vector<32x32xbf16>
    %cst_43 = arith.constant dense<0.000000e+00> : vector<8x32xf32>
    %110 = tpu.matmul %108, %109, %cst_43 {dimension_numbers = #tpu.dot_dimension_numbers<[1], [0], [0], [1], [0, 0, 1, 1], [], []>} : vector<8x32xbf16>, vector<32x32xbf16>, vector<8x32xf32> -> vector<8x32xf32>
    %c0_44 = arith.constant 0 : index
    %c0_45 = arith.constant 0 : index
    %111 = vector.load %arg8[%c0_44, %c0_45] : memref<1x32xf32, #tpu.memory_space<vmem>>, vector<1x32xf32>
    %112 = vector.broadcast %111 : vector<1x32xf32> to vector<8x32xf32>
    %113 = arith.addf %110, %112 : vector<8x32xf32>
    %114 = arith.addf %1, %113 : vector<8x32xf32>
    %c0_46 = arith.constant 0 : index
    %c0_47 = arith.constant 0 : index
    %115 = vector.load %arg9[%c0_46, %c0_47] : memref<1x32xf32, #tpu.memory_space<vmem>>, vector<1x32xf32>
    %c0_48 = arith.constant 0 : index
    %c0_49 = arith.constant 0 : index
    %116 = vector.load %arg10[%c0_48, %c0_49] : memref<1x32xf32, #tpu.memory_space<vmem>>, vector<1x32xf32>
    %cst_50 = arith.constant dense<0.000000e+00> : vector<8xf32>
    %117 = vector.multi_reduction <add>, %114, %cst_50 [1] : vector<8x32xf32> to vector<8xf32>
    %118 = vector.shape_cast %117 : vector<8xf32> to vector<8x1xf32>
    %cst_51 = arith.constant 3.200000e+01 : f32
    %119 = vector.broadcast %cst_51 : f32 to vector<8x1xf32>
    %120 = arith.divf %118, %119 : vector<8x1xf32>
    %121 = vector.broadcast %120 : vector<8x1xf32> to vector<8x32xf32>
    %122 = arith.subf %114, %121 : vector<8x32xf32>
    %123 = vector.broadcast %120 : vector<8x1xf32> to vector<8x32xf32>
    %124 = arith.subf %114, %123 : vector<8x32xf32>
    %125 = arith.mulf %122, %124 : vector<8x32xf32>
    %cst_52 = arith.constant dense<0.000000e+00> : vector<8xf32>
    %126 = vector.multi_reduction <add>, %125, %cst_52 [1] : vector<8x32xf32> to vector<8xf32>
    %127 = vector.shape_cast %126 : vector<8xf32> to vector<8x1xf32>
    %cst_53 = arith.constant 3.200000e+01 : f32
    %128 = vector.broadcast %cst_53 : f32 to vector<8x1xf32>
    %129 = arith.divf %127, %128 : vector<8x1xf32>
    %130 = vector.broadcast %120 : vector<8x1xf32> to vector<8x32xf32>
    %131 = arith.subf %114, %130 : vector<8x32xf32>
    %cst_54 = arith.constant 9.99999974E-6 : f32
    %132 = vector.broadcast %cst_54 : f32 to vector<8x1xf32>
    %133 = arith.addf %129, %132 : vector<8x1xf32>
    %134 = math.rsqrt %133 : vector<8x1xf32>
    %135 = vector.broadcast %134 : vector<8x1xf32> to vector<8x32xf32>
    %136 = arith.mulf %131, %135 : vector<8x32xf32>
    %137 = vector.broadcast %115 : vector<1x32xf32> to vector<8x32xf32>
    %138 = arith.mulf %136, %137 : vector<8x32xf32>
    %139 = vector.broadcast %116 : vector<1x32xf32> to vector<8x32xf32>
    %140 = arith.addf %138, %139 : vector<8x32xf32>
    %141 = arith.truncf %140 : vector<8x32xf32> to vector<8x32xbf16>
    %c0_55 = arith.constant 0 : index
    %c0_56 = arith.constant 0 : index
    %142 = vector.load %arg11[%c0_55, %c0_56] : memref<32x32xbf16, #tpu.memory_space<vmem>>, vector<32x32xbf16>
    %cst_57 = arith.constant dense<0.000000e+00> : vector<8x32xf32>
    %143 = tpu.matmul %141, %142, %cst_57 {dimension_numbers = #tpu.dot_dimension_numbers<[1], [0], [0], [1], [0, 0, 1, 1], [], []>} : vector<8x32xbf16>, vector<32x32xbf16>, vector<8x32xf32> -> vector<8x32xf32>
    %c0_58 = arith.constant 0 : index
    %c0_59 = arith.constant 0 : index
    %144 = vector.load %arg12[%c0_58, %c0_59] : memref<1x32xf32, #tpu.memory_space<vmem>>, vector<1x32xf32>
    %145 = vector.broadcast %144 : vector<1x32xf32> to vector<8x32xf32>
    %146 = arith.addf %143, %145 : vector<8x32xf32>
    %147 = arith.truncf %3 : vector<16x32xf32> to vector<16x32xbf16>
    %c0_60 = arith.constant 0 : index
    %c0_61 = arith.constant 0 : index
    %148 = vector.load %arg13[%c0_60, %c0_61] : memref<32x64xbf16, #tpu.memory_space<vmem>>, vector<32x64xbf16>
    %cst_62 = arith.constant dense<0.000000e+00> : vector<16x64xf32>
    %149 = tpu.matmul %147, %148, %cst_62 {dimension_numbers = #tpu.dot_dimension_numbers<[1], [0], [0], [1], [0, 0, 1, 1], [], []>} : vector<16x32xbf16>, vector<32x64xbf16>, vector<16x64xf32> -> vector<16x64xf32>
    %c0_63 = arith.constant 0 : index
    %c0_64 = arith.constant 0 : index
    %150 = vector.load %arg14[%c0_63, %c0_64] : memref<1x64xf32, #tpu.memory_space<vmem>>, vector<1x64xf32>
    %151 = vector.broadcast %150 : vector<1x64xf32> to vector<16x64xf32>
    %152 = arith.addf %149, %151 : vector<16x64xf32>
    %153 = vector.extract_strided_slice %146 {offsets = [0, 0], sizes = [8, 8], strides = [1, 1]} : vector<8x32xf32> to vector<8x8xf32>
    %154 = arith.truncf %153 : vector<8x8xf32> to vector<8x8xbf16>
    %155 = vector.extract_strided_slice %152 {offsets = [0, 0], sizes = [16, 8], strides = [1, 1]} : vector<16x64xf32> to vector<16x8xf32>
    %156 = arith.truncf %155 : vector<16x8xf32> to vector<16x8xbf16>
    %157 = vector.extract_strided_slice %152 {offsets = [0, 32], sizes = [16, 8], strides = [1, 1]} : vector<16x64xf32> to vector<16x8xf32>
    %158 = arith.truncf %157 : vector<16x8xf32> to vector<16x8xbf16>
    %cst_65 = arith.constant dense<0.000000e+00> : vector<8x16xf32>
    %159 = tpu.matmul %154, %156, %cst_65 {dimension_numbers = #tpu.dot_dimension_numbers<[1], [1], [0], [0], [0, 0, 1, 0], [], []>} : vector<8x8xbf16>, vector<16x8xbf16>, vector<8x16xf32> -> vector<8x16xf32>
    %cst_66 = arith.constant 0.353553385 : f32
    %160 = vector.broadcast %cst_66 : f32 to vector<8x16xf32>
    %161 = arith.mulf %159, %160 : vector<8x16xf32>
    %cst_67 = arith.constant dense<0xFF800000> : vector<8xf32>
    %162 = vector.multi_reduction <maximumf>, %161, %cst_67 [1] : vector<8x16xf32> to vector<8xf32>
    %163 = vector.shape_cast %162 : vector<8xf32> to vector<8x1xf32>
    %164 = vector.broadcast %163 : vector<8x1xf32> to vector<8x16xf32>
    %165 = arith.subf %161, %164 : vector<8x16xf32>
    %166 = math.exp %165 : vector<8x16xf32>
    %cst_68 = arith.constant dense<0.000000e+00> : vector<8xf32>
    %167 = vector.multi_reduction <add>, %166, %cst_68 [1] : vector<8x16xf32> to vector<8xf32>
    %168 = vector.shape_cast %167 : vector<8xf32> to vector<8x1xf32>
    %169 = tpu.reciprocal %168 {approx = true} : vector<8x1xf32> -> vector<8x1xf32>
    %170 = vector.broadcast %169 : vector<8x1xf32> to vector<8x16xf32>
    %171 = arith.mulf %166, %170 : vector<8x16xf32>
    %c0_69 = arith.constant 0 : index
    %c0_70 = arith.constant 0 : index
    %c0_71 = arith.constant 0 : index
    %c0_72 = arith.constant 0 : index
    %172 = vector.load %arg26[%c0_69, %c0_70, %c0_71, %c0_72] : memref<1x4x8x16xf32, #tpu.memory_space<vmem>>, vector<1x1x8x16xf32>
    %173 = vector.shape_cast %172 : vector<1x1x8x16xf32> to vector<8x16xf32>
    %174 = vector.shape_cast %171 : vector<8x16xf32> to vector<1x1x8x16xf32>
    tpu.vector_store %arg26[%c0_69, %c0_70, %c0_71, %c0_72], %174 {strides = array<i32>} : memref<1x4x8x16xf32, #tpu.memory_space<vmem>>, vector<1x1x8x16xf32>,
    %175 = arith.truncf %171 : vector<8x16xf32> to vector<8x16xbf16>
    %cst_73 = arith.constant dense<0.000000e+00> : vector<8x8xf32>
    %176 = tpu.matmul %175, %158, %cst_73 {dimension_numbers = #tpu.dot_dimension_numbers<[1], [0], [0], [1], [0, 0, 1, 1], [], []>} : vector<8x16xbf16>, vector<16x8xbf16>, vector<8x8xf32> -> vector<8x8xf32>
    %c0_74 = arith.constant 0 : index
    %c0_75 = arith.constant 0 : index
    %177 = vector.load %arg27[%c0_74, %c0_75] : memref<8x32xf32, #tpu.memory_space<vmem>>, vector<8x8xf32>
    tpu.vector_store %arg27[%c0_74, %c0_75], %176 {strides = array<i32>} : memref<8x32xf32, #tpu.memory_space<vmem>>, vector<8x8xf32>,
    %178 = vector.extract_strided_slice %146 {offsets = [0, 8], sizes = [8, 8], strides = [1, 1]} : vector<8x32xf32> to vector<8x8xf32>
    %179 = arith.truncf %178 : vector<8x8xf32> to vector<8x8xbf16>
    %180 = vector.extract_strided_slice %152 {offsets = [0, 8], sizes = [16, 8], strides = [1, 1]} : vector<16x64xf32> to vector<16x8xf32>
    %181 = arith.truncf %180 : vector<16x8xf32> to vector<16x8xbf16>
    %182 = vector.extract_strided_slice %152 {offsets = [0, 40], sizes = [16, 8], strides = [1, 1]} : vector<16x64xf32> to vector<16x8xf32>
    %183 = arith.truncf %182 : vector<16x8xf32> to vector<16x8xbf16>
    %cst_76 = arith.constant dense<0.000000e+00> : vector<8x16xf32>
    %184 = tpu.matmul %179, %181, %cst_76 {dimension_numbers = #tpu.dot_dimension_numbers<[1], [1], [0], [0], [0, 0, 1, 0], [], []>} : vector<8x8xbf16>, vector<16x8xbf16>, vector<8x16xf32> -> vector<8x16xf32>
    %cst_77 = arith.constant 0.353553385 : f32
    %185 = vector.broadcast %cst_77 : f32 to vector<8x16xf32>
    %186 = arith.mulf %184, %185 : vector<8x16xf32>
    %cst_78 = arith.constant dense<0xFF800000> : vector<8xf32>
    %187 = vector.multi_reduction <maximumf>, %186, %cst_78 [1] : vector<8x16xf32> to vector<8xf32>
    %188 = vector.shape_cast %187 : vector<8xf32> to vector<8x1xf32>
    %189 = vector.broadcast %188 : vector<8x1xf32> to vector<8x16xf32>
    %190 = arith.subf %186, %189 : vector<8x16xf32>
    %191 = math.exp %190 : vector<8x16xf32>
    %cst_79 = arith.constant dense<0.000000e+00> : vector<8xf32>
    %192 = vector.multi_reduction <add>, %191, %cst_79 [1] : vector<8x16xf32> to vector<8xf32>
    %193 = vector.shape_cast %192 : vector<8xf32> to vector<8x1xf32>
    %194 = tpu.reciprocal %193 {approx = true} : vector<8x1xf32> -> vector<8x1xf32>
    %195 = vector.broadcast %194 : vector<8x1xf32> to vector<8x16xf32>
    %196 = arith.mulf %191, %195 : vector<8x16xf32>
    %c0_80 = arith.constant 0 : index
    %c1 = arith.constant 1 : index
    %c0_81 = arith.constant 0 : index
    %c0_82 = arith.constant 0 : index
    %197 = vector.load %arg26[%c0_80, %c1, %c0_81, %c0_82] : memref<1x4x8x16xf32, #tpu.memory_space<vmem>>, vector<1x1x8x16xf32>
    %198 = vector.shape_cast %197 : vector<1x1x8x16xf32> to vector<8x16xf32>
    %199 = vector.shape_cast %196 : vector<8x16xf32> to vector<1x1x8x16xf32>
    tpu.vector_store %arg26[%c0_80, %c1, %c0_81, %c0_82], %199 {strides = array<i32>} : memref<1x4x8x16xf32, #tpu.memory_space<vmem>>, vector<1x1x8x16xf32>,
    %200 = arith.truncf %196 : vector<8x16xf32> to vector<8x16xbf16>
    %cst_83 = arith.constant dense<0.000000e+00> : vector<8x8xf32>
    %201 = tpu.matmul %200, %183, %cst_83 {dimension_numbers = #tpu.dot_dimension_numbers<[1], [0], [0], [1], [0, 0, 1, 1], [], []>} : vector<8x16xbf16>, vector<16x8xbf16>, vector<8x8xf32> -> vector<8x8xf32>
    %c0_84 = arith.constant 0 : index
    %c8_85 = arith.constant 8 : index
    %202 = vector.load %arg27[%c0_84, %c8_85] : memref<8x32xf32, #tpu.memory_space<vmem>>, vector<8x8xf32>
    tpu.vector_store %arg27[%c0_84, %c8_85], %201 {strides = array<i32>} : memref<8x32xf32, #tpu.memory_space<vmem>>, vector<8x8xf32>,
    %203 = vector.extract_strided_slice %146 {offsets = [0, 16], sizes = [8, 8], strides = [1, 1]} : vector<8x32xf32> to vector<8x8xf32>
    %204 = arith.truncf %203 : vector<8x8xf32> to vector<8x8xbf16>
    %205 = vector.extract_strided_slice %152 {offsets = [0, 16], sizes = [16, 8], strides = [1, 1]} : vector<16x64xf32> to vector<16x8xf32>
    %206 = arith.truncf %205 : vector<16x8xf32> to vector<16x8xbf16>
    %207 = vector.extract_strided_slice %152 {offsets = [0, 48], sizes = [16, 8], strides = [1, 1]} : vector<16x64xf32> to vector<16x8xf32>
    %208 = arith.truncf %207 : vector<16x8xf32> to vector<16x8xbf16>
    %cst_86 = arith.constant dense<0.000000e+00> : vector<8x16xf32>
    %209 = tpu.matmul %204, %206, %cst_86 {dimension_numbers = #tpu.dot_dimension_numbers<[1], [1], [0], [0], [0, 0, 1, 0], [], []>} : vector<8x8xbf16>, vector<16x8xbf16>, vector<8x16xf32> -> vector<8x16xf32>
    %cst_87 = arith.constant 0.353553385 : f32
    %210 = vector.broadcast %cst_87 : f32 to vector<8x16xf32>
    %211 = arith.mulf %209, %210 : vector<8x16xf32>
    %cst_88 = arith.constant dense<0xFF800000> : vector<8xf32>
    %212 = vector.multi_reduction <maximumf>, %211, %cst_88 [1] : vector<8x16xf32> to vector<8xf32>
    %213 = vector.shape_cast %212 : vector<8xf32> to vector<8x1xf32>
    %214 = vector.broadcast %213 : vector<8x1xf32> to vector<8x16xf32>
    %215 = arith.subf %211, %214 : vector<8x16xf32>
    %216 = math.exp %215 : vector<8x16xf32>
    %cst_89 = arith.constant dense<0.000000e+00> : vector<8xf32>
    %217 = vector.multi_reduction <add>, %216, %cst_89 [1] : vector<8x16xf32> to vector<8xf32>
    %218 = vector.shape_cast %217 : vector<8xf32> to vector<8x1xf32>
    %219 = tpu.reciprocal %218 {approx = true} : vector<8x1xf32> -> vector<8x1xf32>
    %220 = vector.broadcast %219 : vector<8x1xf32> to vector<8x16xf32>
    %221 = arith.mulf %216, %220 : vector<8x16xf32>
    %c0_90 = arith.constant 0 : index
    %c2 = arith.constant 2 : index
    %c0_91 = arith.constant 0 : index
    %c0_92 = arith.constant 0 : index
    %222 = vector.load %arg26[%c0_90, %c2, %c0_91, %c0_92] : memref<1x4x8x16xf32, #tpu.memory_space<vmem>>, vector<1x1x8x16xf32>
    %223 = vector.shape_cast %222 : vector<1x1x8x16xf32> to vector<8x16xf32>
    %224 = vector.shape_cast %221 : vector<8x16xf32> to vector<1x1x8x16xf32>
    tpu.vector_store %arg26[%c0_90, %c2, %c0_91, %c0_92], %224 {strides = array<i32>} : memref<1x4x8x16xf32, #tpu.memory_space<vmem>>, vector<1x1x8x16xf32>,
    %225 = arith.truncf %221 : vector<8x16xf32> to vector<8x16xbf16>
    %cst_93 = arith.constant dense<0.000000e+00> : vector<8x8xf32>
    %226 = tpu.matmul %225, %208, %cst_93 {dimension_numbers = #tpu.dot_dimension_numbers<[1], [0], [0], [1], [0, 0, 1, 1], [], []>} : vector<8x16xbf16>, vector<16x8xbf16>, vector<8x8xf32> -> vector<8x8xf32>
    %c0_94 = arith.constant 0 : index
    %c16_95 = arith.constant 16 : index
    %227 = vector.load %arg27[%c0_94, %c16_95] : memref<8x32xf32, #tpu.memory_space<vmem>>, vector<8x8xf32>
    tpu.vector_store %arg27[%c0_94, %c16_95], %226 {strides = array<i32>} : memref<8x32xf32, #tpu.memory_space<vmem>>, vector<8x8xf32>,
    %228 = vector.extract_strided_slice %146 {offsets = [0, 24], sizes = [8, 8], strides = [1, 1]} : vector<8x32xf32> to vector<8x8xf32>
    %229 = arith.truncf %228 : vector<8x8xf32> to vector<8x8xbf16>
    %230 = vector.extract_strided_slice %152 {offsets = [0, 24], sizes = [16, 8], strides = [1, 1]} : vector<16x64xf32> to vector<16x8xf32>
    %231 = arith.truncf %230 : vector<16x8xf32> to vector<16x8xbf16>
    %232 = vector.extract_strided_slice %152 {offsets = [0, 56], sizes = [16, 8], strides = [1, 1]} : vector<16x64xf32> to vector<16x8xf32>
    %233 = arith.truncf %232 : vector<16x8xf32> to vector<16x8xbf16>
    %cst_96 = arith.constant dense<0.000000e+00> : vector<8x16xf32>
    %234 = tpu.matmul %229, %231, %cst_96 {dimension_numbers = #tpu.dot_dimension_numbers<[1], [1], [0], [0], [0, 0, 1, 0], [], []>} : vector<8x8xbf16>, vector<16x8xbf16>, vector<8x16xf32> -> vector<8x16xf32>
    %cst_97 = arith.constant 0.353553385 : f32
    %235 = vector.broadcast %cst_97 : f32 to vector<8x16xf32>
    %236 = arith.mulf %234, %235 : vector<8x16xf32>
    %cst_98 = arith.constant dense<0xFF800000> : vector<8xf32>
    %237 = vector.multi_reduction <maximumf>, %236, %cst_98 [1] : vector<8x16xf32> to vector<8xf32>
    %238 = vector.shape_cast %237 : vector<8xf32> to vector<8x1xf32>
    %239 = vector.broadcast %238 : vector<8x1xf32> to vector<8x16xf32>
    %240 = arith.subf %236, %239 : vector<8x16xf32>
    %241 = math.exp %240 : vector<8x16xf32>
    %cst_99 = arith.constant dense<0.000000e+00> : vector<8xf32>
    %242 = vector.multi_reduction <add>, %241, %cst_99 [1] : vector<8x16xf32> to vector<8xf32>
    %243 = vector.shape_cast %242 : vector<8xf32> to vector<8x1xf32>
    %244 = tpu.reciprocal %243 {approx = true} : vector<8x1xf32> -> vector<8x1xf32>
    %245 = vector.broadcast %244 : vector<8x1xf32> to vector<8x16xf32>
    %246 = arith.mulf %241, %245 : vector<8x16xf32>
    %c0_100 = arith.constant 0 : index
    %c3 = arith.constant 3 : index
    %c0_101 = arith.constant 0 : index
    %c0_102 = arith.constant 0 : index
    %247 = vector.load %arg26[%c0_100, %c3, %c0_101, %c0_102] : memref<1x4x8x16xf32, #tpu.memory_space<vmem>>, vector<1x1x8x16xf32>
    %248 = vector.shape_cast %247 : vector<1x1x8x16xf32> to vector<8x16xf32>
    %249 = vector.shape_cast %246 : vector<8x16xf32> to vector<1x1x8x16xf32>
    tpu.vector_store %arg26[%c0_100, %c3, %c0_101, %c0_102], %249 {strides = array<i32>} : memref<1x4x8x16xf32, #tpu.memory_space<vmem>>, vector<1x1x8x16xf32>,
    %250 = arith.truncf %246 : vector<8x16xf32> to vector<8x16xbf16>
    %cst_103 = arith.constant dense<0.000000e+00> : vector<8x8xf32>
    %251 = tpu.matmul %250, %233, %cst_103 {dimension_numbers = #tpu.dot_dimension_numbers<[1], [0], [0], [1], [0, 0, 1, 1], [], []>} : vector<8x16xbf16>, vector<16x8xbf16>, vector<8x8xf32> -> vector<8x8xf32>
    %c0_104 = arith.constant 0 : index
    %c24_105 = arith.constant 24 : index
    %252 = vector.load %arg27[%c0_104, %c24_105] : memref<8x32xf32, #tpu.memory_space<vmem>>, vector<8x8xf32>
    tpu.vector_store %arg27[%c0_104, %c24_105], %251 {strides = array<i32>} : memref<8x32xf32, #tpu.memory_space<vmem>>, vector<8x8xf32>,
    %c0_106 = arith.constant 0 : index
    %c0_107 = arith.constant 0 : index
    %253 = vector.load %arg27[%c0_106, %c0_107] : memref<8x32xf32, #tpu.memory_space<vmem>>, vector<8x32xf32>
    %254 = arith.truncf %253 : vector<8x32xf32> to vector<8x32xbf16>
    %c0_108 = arith.constant 0 : index
    %c0_109 = arith.constant 0 : index
    %255 = vector.load %arg15[%c0_108, %c0_109] : memref<32x32xbf16, #tpu.memory_space<vmem>>, vector<32x32xbf16>
    %cst_110 = arith.constant dense<0.000000e+00> : vector<8x32xf32>
    %256 = tpu.matmul %254, %255, %cst_110 {dimension_numbers = #tpu.dot_dimension_numbers<[1], [0], [0], [1], [0, 0, 1, 1], [], []>} : vector<8x32xbf16>, vector<32x32xbf16>, vector<8x32xf32> -> vector<8x32xf32>
    %c0_111 = arith.constant 0 : index
    %c0_112 = arith.constant 0 : index
    %257 = vector.load %arg16[%c0_111, %c0_112] : memref<1x32xf32, #tpu.memory_space<vmem>>, vector<1x32xf32>
    %258 = vector.broadcast %257 : vector<1x32xf32> to vector<8x32xf32>
    %259 = arith.addf %256, %258 : vector<8x32xf32>
    %260 = arith.addf %140, %259 : vector<8x32xf32>
    %c0_113 = arith.constant 0 : index
    %c0_114 = arith.constant 0 : index
    %261 = vector.load %arg17[%c0_113, %c0_114] : memref<1x32xf32, #tpu.memory_space<vmem>>, vector<1x32xf32>
    %c0_115 = arith.constant 0 : index
    %c0_116 = arith.constant 0 : index
    %262 = vector.load %arg18[%c0_115, %c0_116] : memref<1x32xf32, #tpu.memory_space<vmem>>, vector<1x32xf32>
    %cst_117 = arith.constant dense<0.000000e+00> : vector<8xf32>
    %263 = vector.multi_reduction <add>, %260, %cst_117 [1] : vector<8x32xf32> to vector<8xf32>
    %264 = vector.shape_cast %263 : vector<8xf32> to vector<8x1xf32>
    %cst_118 = arith.constant 3.200000e+01 : f32
    %265 = vector.broadcast %cst_118 : f32 to vector<8x1xf32>
    %266 = arith.divf %264, %265 : vector<8x1xf32>
    %267 = vector.broadcast %266 : vector<8x1xf32> to vector<8x32xf32>
    %268 = arith.subf %260, %267 : vector<8x32xf32>
    %269 = vector.broadcast %266 : vector<8x1xf32> to vector<8x32xf32>
    %270 = arith.subf %260, %269 : vector<8x32xf32>
    %271 = arith.mulf %268, %270 : vector<8x32xf32>
    %cst_119 = arith.constant dense<0.000000e+00> : vector<8xf32>
    %272 = vector.multi_reduction <add>, %271, %cst_119 [1] : vector<8x32xf32> to vector<8xf32>
    %273 = vector.shape_cast %272 : vector<8xf32> to vector<8x1xf32>
    %cst_120 = arith.constant 3.200000e+01 : f32
    %274 = vector.broadcast %cst_120 : f32 to vector<8x1xf32>
    %275 = arith.divf %273, %274 : vector<8x1xf32>
    %276 = vector.broadcast %266 : vector<8x1xf32> to vector<8x32xf32>
    %277 = arith.subf %260, %276 : vector<8x32xf32>
    %cst_121 = arith.constant 9.99999974E-6 : f32
    %278 = vector.broadcast %cst_121 : f32 to vector<8x1xf32>
    %279 = arith.addf %275, %278 : vector<8x1xf32>
    %280 = math.rsqrt %279 : vector<8x1xf32>
    %281 = vector.broadcast %280 : vector<8x1xf32> to vector<8x32xf32>
    %282 = arith.mulf %277, %281 : vector<8x32xf32>
    %283 = vector.broadcast %261 : vector<1x32xf32> to vector<8x32xf32>
    %284 = arith.mulf %282, %283 : vector<8x32xf32>
    %285 = vector.broadcast %262 : vector<1x32xf32> to vector<8x32xf32>
    %286 = arith.addf %284, %285 : vector<8x32xf32>
    %287 = arith.truncf %286 : vector<8x32xf32> to vector<8x32xbf16>
    %c0_122 = arith.constant 0 : index
    %c0_123 = arith.constant 0 : index
    %288 = vector.load %arg19[%c0_122, %c0_123] : memref<32x64xbf16, #tpu.memory_space<vmem>>, vector<32x64xbf16>
    %cst_124 = arith.constant dense<0.000000e+00> : vector<8x64xf32>
    %289 = tpu.matmul %287, %288, %cst_124 {dimension_numbers = #tpu.dot_dimension_numbers<[1], [0], [0], [1], [0, 0, 1, 1], [], []>} : vector<8x32xbf16>, vector<32x64xbf16>, vector<8x64xf32> -> vector<8x64xf32>
    %c0_125 = arith.constant 0 : index
    %c0_126 = arith.constant 0 : index
    %290 = vector.load %arg20[%c0_125, %c0_126] : memref<1x64xf32, #tpu.memory_space<vmem>>, vector<1x64xf32>
    %291 = vector.broadcast %290 : vector<1x64xf32> to vector<8x64xf32>
    %292 = arith.addf %289, %291 : vector<8x64xf32>
    %cst_127 = arith.constant 0.000000e+00 : f32
    %293 = vector.broadcast %cst_127 : f32 to vector<8x64xf32>
    %294 = arith.maximumf %292, %293 : vector<8x64xf32>
    %295 = arith.truncf %294 : vector<8x64xf32> to vector<8x64xbf16>
    %c0_128 = arith.constant 0 : index
    %c0_129 = arith.constant 0 : index
    %296 = vector.load %arg21[%c0_128, %c0_129] : memref<64x32xbf16, #tpu.memory_space<vmem>>, vector<64x32xbf16>
    %cst_130 = arith.constant dense<0.000000e+00> : vector<8x32xf32>
    %297 = tpu.matmul %295, %296, %cst_130 {dimension_numbers = #tpu.dot_dimension_numbers<[1], [0], [0], [1], [0, 0, 1, 1], [], []>} : vector<8x64xbf16>, vector<64x32xbf16>, vector<8x32xf32> -> vector<8x32xf32>
    %c0_131 = arith.constant 0 : index
    %c0_132 = arith.constant 0 : index
    %298 = vector.load %arg22[%c0_131, %c0_132] : memref<1x32xf32, #tpu.memory_space<vmem>>, vector<1x32xf32>
    %299 = vector.broadcast %298 : vector<1x32xf32> to vector<8x32xf32>
    %300 = arith.addf %297, %299 : vector<8x32xf32>
    %301 = arith.addf %286, %300 : vector<8x32xf32>
    %c0_133 = arith.constant 0 : index
    %c0_134 = arith.constant 0 : index
    %302 = vector.load %arg23[%c0_133, %c0_134] : memref<1x32xf32, #tpu.memory_space<vmem>>, vector<1x32xf32>
    %c0_135 = arith.constant 0 : index
    %c0_136 = arith.constant 0 : index
    %303 = vector.load %arg24[%c0_135, %c0_136] : memref<1x32xf32, #tpu.memory_space<vmem>>, vector<1x32xf32>
    %cst_137 = arith.constant dense<0.000000e+00> : vector<8xf32>
    %304 = vector.multi_reduction <add>, %301, %cst_137 [1] : vector<8x32xf32> to vector<8xf32>
    %305 = vector.shape_cast %304 : vector<8xf32> to vector<8x1xf32>
    %cst_138 = arith.constant 3.200000e+01 : f32
    %306 = vector.broadcast %cst_138 : f32 to vector<8x1xf32>
    %307 = arith.divf %305, %306 : vector<8x1xf32>
    %308 = vector.broadcast %307 : vector<8x1xf32> to vector<8x32xf32>
    %309 = arith.subf %301, %308 : vector<8x32xf32>
    %310 = vector.broadcast %307 : vector<8x1xf32> to vector<8x32xf32>
    %311 = arith.subf %301, %310 : vector<8x32xf32>
    %312 = arith.mulf %309, %311 : vector<8x32xf32>
    %cst_139 = arith.constant dense<0.000000e+00> : vector<8xf32>
    %313 = vector.multi_reduction <add>, %312, %cst_139 [1] : vector<8x32xf32> to vector<8xf32>
    %314 = vector.shape_cast %313 : vector<8xf32> to vector<8x1xf32>
    %cst_140 = arith.constant 3.200000e+01 : f32
    %315 = vector.broadcast %cst_140 : f32 to vector<8x1xf32>
    %316 = arith.divf %314, %315 : vector<8x1xf32>
    %317 = vector.broadcast %307 : vector<8x1xf32> to vector<8x32xf32>
    %318 = arith.subf %301, %317 : vector<8x32xf32>
    %cst_141 = arith.constant 9.99999974E-6 : f32
    %319 = vector.broadcast %cst_141 : f32 to vector<8x1xf32>
    %320 = arith.addf %316, %319 : vector<8x1xf32>
    %321 = math.rsqrt %320 : vector<8x1xf32>
    %322 = vector.broadcast %321 : vector<8x1xf32> to vector<8x32xf32>
    %323 = arith.mulf %318, %322 : vector<8x32xf32>
    %324 = vector.broadcast %302 : vector<1x32xf32> to vector<8x32xf32>
    %325 = arith.mulf %323, %324 : vector<8x32xf32>
    %326 = vector.broadcast %303 : vector<1x32xf32> to vector<8x32xf32>
    %327 = arith.addf %325, %326 : vector<8x32xf32>
    %c0_142 = arith.constant 0 : index
    %c0_143 = arith.constant 0 : index
    %c0_144 = arith.constant 0 : index
    %328 = vector.load %arg25[%c0_142, %c0_143, %c0_144] : memref<1x8x32xf32, #tpu.memory_space<vmem>>, vector<1x8x32xf32>
    %329 = vector.shape_cast %328 : vector<1x8x32xf32> to vector<8x32xf32>
    %330 = vector.shape_cast %327 : vector<8x32xf32> to vector<1x8x32xf32>
    tpu.vector_store %arg25[%c0_142, %c0_143, %c0_144], %330 {strides = array<i32>} : memref<1x8x32xf32, #tpu.memory_space<vmem>>, vector<1x8x32xf32>,
    return
  }
  func.func @transform_0(%arg0: i32) -> (i32, i32, i32) {
    %c0_i32 = arith.constant 0 : i32
    %c0_i32_0 = arith.constant 0 : i32
    %c0_i32_1 = arith.constant 0 : i32
    return %arg0, %c0_i32, %c0_i32_0 : i32, i32, i32
  }
  func.func @transform_1(%arg0: i32) -> (i32, i32, i32) {
    %c0_i32 = arith.constant 0 : i32
    %c0_i32_0 = arith.constant 0 : i32
    %c0_i32_1 = arith.constant 0 : i32
    return %arg0, %c0_i32, %c0_i32_0 : i32, i32, i32
  }
  func.func @transform_2(%arg0: i32) -> (i32, i32) {
    %c0_i32 = arith.constant 0 : i32
    %c0_i32_0 = arith.constant 0 : i32
    %c0_i32_1 = arith.constant 0 : i32
    return %c0_i32, %c0_i32_0 : i32, i32
  }
  func.func @transform_3(%arg0: i32) -> (i32, i32, i32) {
    %c0_i32 = arith.constant 0 : i32
    %c0_i32_0 = arith.constant 0 : i32
    %c0_i32_1 = arith.constant 0 : i32
    return %arg0, %c0_i32, %c0_i32_0 : i32, i32, i32
  }
  func.func @transform_4(%arg0: i32) -> (i32, i32) {
    %c0_i32 = arith.constant 0 : i32
    %c0_i32_0 = arith.constant 0 : i32
    %c0_i32_1 = arith.constant 0 : i32
    return %c0_i32, %c0_i32_0 : i32, i32
  }
  func.func @transform_5(%arg0: i32) -> (i32, i32) {
    %c0_i32 = arith.constant 0 : i32
    %c0_i32_0 = arith.constant 0 : i32
    %c0_i32_1 = arith.constant 0 : i32
    return %c0_i32, %c0_i32_0 : i32, i32
  }
  func.func @transform_6(%arg0: i32) -> (i32, i32) {
    %c0_i32 = arith.constant 0 : i32
    %c0_i32_0 = arith.constant 0 : i32
    %c0_i32_1 = arith.constant 0 : i32
    return %c0_i32, %c0_i32_0 : i32, i32
  }
  func.func @transform_7(%arg0: i32) -> (i32, i32) {
    %c0_i32 = arith.constant 0 : i32
    %c0_i32_0 = arith.constant 0 : i32
    %c0_i32_1 = arith.constant 0 : i32
    return %c0_i32, %c0_i32_0 : i32, i32
  }
  func.func @transform_8(%arg0: i32) -> (i32, i32) {
    %c0_i32 = arith.constant 0 : i32
    %c0_i32_0 = arith.constant 0 : i32
    %c0_i32_1 = arith.constant 0 : i32
    return %c0_i32, %c0_i32_0 : i32, i32
  }
  func.func @transform_9(%arg0: i32) -> (i32, i32) {
    %c0_i32 = arith.constant 0 : i32
    %c0_i32_0 = arith.constant 0 : i32
    %c0_i32_1 = arith.constant 0 : i32
    return %c0_i32, %c0_i32_0 : i32, i32
  }
  func.func @transform_10(%arg0: i32) -> (i32, i32) {
    %c0_i32 = arith.constant 0 : i32
    %c0_i32_0 = arith.constant 0 : i32
    %c0_i32_1 = arith.constant 0 : i32
    return %c0_i32, %c0_i32_0 : i32, i32
  }
  func.func @transform_11(%arg0: i32) -> (i32, i32) {
    %c0_i32 = arith.constant 0 : i32
    %c0_i32_0 = arith.constant 0 : i32
    %c0_i32_1 = arith.constant 0 : i32
    return %c0_i32, %c0_i32_0 : i32, i32
  }
  func.func @transform_12(%arg0: i32) -> (i32, i32) {
    %c0_i32 = arith.constant 0 : i32
    %c0_i32_0 = arith.constant 0 : i32
    %c0_i32_1 = arith.constant 0 : i32
    return %c0_i32, %c0_i32_0 : i32, i32
  }
  func.func @transform_13(%arg0: i32) -> (i32, i32) {
    %c0_i32 = arith.constant 0 : i32
    %c0_i32_0 = arith.constant 0 : i32
    %c0_i32_1 = arith.constant 0 : i32
    return %c0_i32, %c0_i32_0 : i32, i32
  }
  func.func @transform_14(%arg0: i32) -> (i32, i32) {
    %c0_i32 = arith.constant 0 : i32
    %c0_i32_0 = arith.constant 0 : i32
    %c0_i32_1 = arith.constant 0 : i32
    return %c0_i32, %c0_i32_0 : i32, i32
  }
  func.func @transform_15(%arg0: i32) -> (i32, i32) {
    %c0_i32 = arith.constant 0 : i32
    %c0_i32_0 = arith.constant 0 : i32
    %c0_i32_1 = arith.constant 0 : i32
    return %c0_i32, %c0_i32_0 : i32, i32
  }
  func.func @transform_16(%arg0: i32) -> (i32, i32) {
    %c0_i32 = arith.constant 0 : i32
    %c0_i32_0 = arith.constant 0 : i32
    %c0_i32_1 = arith.constant 0 : i32
    return %c0_i32, %c0_i32_0 : i32, i32
  }
  func.func @transform_17(%arg0: i32) -> (i32, i32) {
    %c0_i32 = arith.constant 0 : i32
    %c0_i32_0 = arith.constant 0 : i32
    %c0_i32_1 = arith.constant 0 : i32
    return %c0_i32, %c0_i32_0 : i32, i32
  }
  func.func @transform_18(%arg0: i32) -> (i32, i32) {
    %c0_i32 = arith.constant 0 : i32
    %c0_i32_0 = arith.constant 0 : i32
    %c0_i32_1 = arith.constant 0 : i32
    return %c0_i32, %c0_i32_0 : i32, i32
  }
  func.func @transform_19(%arg0: i32) -> (i32, i32) {
    %c0_i32 = arith.constant 0 : i32
    %c0_i32_0 = arith.constant 0 : i32
    %c0_i32_1 = arith.constant 0 : i32
    return %c0_i32, %c0_i32_0 : i32, i32
  }
  func.func @transform_20(%arg0: i32) -> (i32, i32) {
    %c0_i32 = arith.constant 0 : i32
    %c0_i32_0 = arith.constant 0 : i32
    %c0_i32_1 = arith.constant 0 : i32
    return %c0_i32, %c0_i32_0 : i32, i32
  }
  func.func @transform_21(%arg0: i32) -> (i32, i32) {
    %c0_i32 = arith.constant 0 : i32
    %c0_i32_0 = arith.constant 0 : i32
    %c0_i32_1 = arith.constant 0 : i32
    return %c0_i32, %c0_i32_0 : i32, i32
  }
  func.func @transform_22(%arg0: i32) -> (i32, i32) {
    %c0_i32 = arith.constant 0 : i32
    %c0_i32_0 = arith.constant 0 : i32
    %c0_i32_1 = arith.constant 0 : i32
    return %c0_i32, %c0_i32_0 : i32, i32
  }
  func.func @transform_23(%arg0: i32) -> (i32, i32) {
    %c0_i32 = arith.constant 0 : i32
    %c0_i32_0 = arith.constant 0 : i32
    %c0_i32_1 = arith.constant 0 : i32
    return %c0_i32, %c0_i32_0 : i32, i32
  }
  func.func @transform_24(%arg0: i32) -> (i32, i32, i32) {
    %c0_i32 = arith.constant 0 : i32
    %c0_i32_0 = arith.constant 0 : i32
    %c0_i32_1 = arith.constant 0 : i32
    return %arg0, %c0_i32, %c0_i32_0 : i32, i32, i32
  }
  func.func @transform_25(%arg0: i32) -> (i32, i32, i32, i32) {
    %c0_i32 = arith.constant 0 : i32
    %c0_i32_0 = arith.constant 0 : i32
    %c0_i32_1 = arith.constant 0 : i32
    %c0_i32_2 = arith.constant 0 : i32
    return %arg0, %c0_i32, %c0_i32_0, %c0_i32_1 : i32, i32, i32, i32
  }
}

</mosaic_0001>

<bundles_post_ra>
// kernel: decoder_layer_forward.1
= control target key start
LH: loop header
LB: loop body
LE: loop exit
PB: predicated region body
PF: predicated region fallthrough
CT: control target
= control target key end

     0   :  { %s2998_s0 = inlined_call_operand.vmem [shape: f32[2,8,32], index: 0, kind: input, shape index: {}]   ;;  %s2999_s1 = inlined_call_operand.vmem [shape: f32[2,16,32], index: 1, kind: input, shape index: {}]   ;;  %s3000_s2 = inlined_call_operand.vmem [shape: f32[8,8], index: 2, kind: input, shape index: {}]   ;;  %s3001_s3 = inlined_call_operand.vmem [shape: f32[2,1,8], index: 3, kind: input, shape index: {}]   ;;  %s3002_s4 = inlined_call_operand.vmem [shape: bf16[32,96], index: 4, kind: input, shape index: {}]   ;;  %s3003_s5 = inlined_call_operand.vmem [shape: f32[1,96], index: 5, kind: input, shape index: {}]   ;;  %s3004_s6 = inlined_call_operand.vmem [shape: bf16[32,32], index: 6, kind: input, shape index: {}]   ;;  %s3005_s7 = inlined_call_operand.vmem [shape: f32[1,32], index: 7, kind: input, shape index: {}]   ;;  %s3006_s8 = inlined_call_operand.vmem [shape: f32[1,32], index: 8, kind: input, shape index: {}]   ;;  %s3007_s9 = inlined_call_operand.vmem [shape: f32[1,32], index: 9, kind: input, shape index: {}]   ;;  %s3008_s10 = inlined_call_operand.vmem [shape: bf16[32,32], index: 10, kind: input, shape index: {}]   ;;  %s3009_s11 = inlined_call_operand.vmem [shape: f32[1,32], index: 11, kind: input, shape index: {}]   ;;  %s3010_s12 = inlined_call_operand.vmem [shape: bf16[32,64], index: 12, kind: input, shape index: {}]   ;;  %s3011_s13 = inlined_call_operand.vmem [shape: f32[1,64], index: 13, kind: input, shape index: {}]   ;;  %s3012_s14 = inlined_call_operand.vmem [shape: bf16[32,32], index: 14, kind: input, shape index: {}]   ;;  %s3013_s15 = inlined_call_operand.vmem [shape: f32[1,32], index: 15, kind: input, shape index: {}]   ;;  %s3014_s16 = inlined_call_operand.vmem [shape: f32[1,32], index: 16, kind: input, shape index: {}]   ;;  %s3015_s17 = inlined_call_operand.hbm [shape: f32[1,32], index: 17, kind: input, shape index: {}]   ;;  %s3016_s18 = inlined_call_operand.vmem [shape: bf16[32,64], index: 18, kind: input, shape index: {}]   ;;  %s3017_s19 = inlined_call_operand.hbm [shape: f32[1,64], index: 19, kind: input, shape index: {}]   ;;  %s3018_s20 = inlined_call_operand.vmem [shape: bf16[64,32], index: 20, kind: input, shape index: {}]   ;;  %s3019_s21 = inlined_call_operand.hbm [shape: f32[1,32], index: 21, kind: input, shape index: {}]   ;;  %s3020_s22 = inlined_call_operand.hbm [shape: f32[1,32], index: 22, kind: input, shape index: {}]   ;;  %s3021_s23 = inlined_call_operand.hbm [shape: f32[1,32], index: 23, kind: input, shape index: {}]   ;;  %s3022_s24 = inlined_call_operand.vmem [shape: f32[2,8,32], index: 24, kind: output, shape index: {0}]   ;;  %s3023_s25 = inlined_call_operand.hbm [shape: f32[2,4,8,16], index: 25, kind: output, shape index: {1}]  }
   0x1   :  { %3042 = sst [smem:[#allocation23_spill]] %s2998_s0 }
   0x2   :  { %3043 = sst [smem:[#allocation24_spill]] %s2999_s1 }
   0x3   :  { %3044 = sst [smem:[#allocation25_spill]] %s3000_s2 }
   0x4   :  { %3045 = sst [smem:[#allocation26_spill]] %s3001_s3 }
   0x5   :  { %3046 = sst [smem:[#allocation27_spill]] %s3002_s4 }
   0x6   :  { %3047 = sst [smem:[#allocation28_spill]] %s3003_s5 }
   0x7   :  { %3048 = sst [smem:[#allocation29_spill]] %s3004_s6 }
   0x8   :  { %3049 = sst [smem:[#allocation30_spill]] %s3005_s7 }
   0x9   :  { %3050 = sst [smem:[#allocation31_spill]] %s3006_s8 }
   0xa   :  { %3051 = sst [smem:[#allocation32_spill]] %s3007_s9 }
   0xb   :  { %3052 = sst [smem:[#allocation33_spill]] %s3008_s10 }
   0xc   :  { %3053 = sst [smem:[#allocation34_spill]] %s3015_s17 }
   0xd   :  { %3054 = sst [smem:[#allocation35_spill]] %s3017_s19 }
   0xe   :  { %3055 = sst [smem:[#allocation36_spill]] %s3020_s22 }
   0xf   :  { %3056 = sst [smem:[#allocation37_spill]] %s3022_s24 }
  0x10   :  { %31 = vsyncpa [#allocation4], 0 }
  0x11   :  { %32 = vsyncpa [#allocation7], 0 }
  0x12   :  { %33 = vsyncpa [#allocation10], 0 }
  0x13   :  { %34 = vsyncpa [#allocation5], 0 }
  0x14   :  { %36 = vsyncpa [#allocation5 + $0x1], 0  ;;  %s2622_s29 = smov 0   ;;  %s2624_s2 = smov 0  }
  0x15   :  { %s2626_s6 = smov 0   ;;  %s2628_s30 = smov 0  }
  0x16 LB: > { %3057 = sst [smem:[#allocation17_spill]] %s2457_s29  ;;  %s2643_s7 = sadd.s32 4294967295, %s2469_s30   ;;  %s2469_s30 = sphi %s2628_s30, %s3094_s30   ;;  %s2465_s6 = sphi %s2626_s6, %s3096_s6   ;;  %s2461_s2 = sphi %s2624_s2, %s3098_s2   ;;  %s2457_s29 = sphi %s2622_s29, %s3097_s29  }
  0x17   : > { %3058 = sst [smem:[#allocation18_spill]] %s2465_s6  ;;  %s1953_s3 = sadd.s32 4294967294, %s2469_s30  }
  0x18   : > { %3059 = sst [smem:[#allocation19_spill]] %s2469_s30  ;;  %s2647_s26 = sadd.s32 1, %s2469_s30  }
  0x19   : > { %3060 = sst [smem:[#allocation20_spill]] %s2647_s26  ;;  %s594_s1 = sadd.s32 1, %s2465_s6 }
  0x1a   : > { %s591_s8 = ssub.s32 %s2469_s30, %s2647_s26  ;;  %p604_p0 = scmp.ne.s32.totalorder %s2465_s6, %s2461_s2 }
  0x1b   : > { %p592_p1 = scmp.eq.s32.totalorder %s591_s8, 0  ;;  %p605_p2 = scmp.eq.s32.totalorder %s2643_s7, 1 }
  0x1c   : > { %p610_p3 = scmp.ne.s32.totalorder %s2461_s2, %s2457_s29  ;;  %p611_p4 = scmp.eq.s32.totalorder %s1953_s3, 1 }
  0x1d   : > { %s2658_s27 = scalar_select %p592_p1, %s2465_s6, %s594_s1  }
  0x1e   : > { %p2660_p5 = por %p605_p2, %p604_p0  ;;  %p2664_p6 = por %p611_p4, %p610_p3 }
  0x1f   : > { %3061 = sst [smem:[#allocation21_spill]] %s2658_s27  ;;  %p1954_p7 = scmp.ge.s32.totalorder %s2469_s30, 1 }
  0x20   : > { %s3063_s28 = scalar_select %p2664_p6, 1, 0 }
  0x21   : > { %p618_p8 = scmp.lt.s32.totalorder %s2469_s30, 3  ;;  %p2127_p9 = scmp.eq.s32.totalorder %s2643_s7, 0 }
  0x22   : > { %3064 = sst [smem:[#allocation22_spill]] %s3063_s28  ;;  %s2471_s1 = smov [#allocation6]  }
  0x23   : > { %p2671_p10 = pnand %p1954_p7, %p618_p8  ;;  %s3066_s19 = sld [smem:[#allocation35_spill]] }
  0x24   : > { %s689_s8 = sshll.u32 %s2471_s1, 4  ;;  %s3067_s22 = sld [smem:[#allocation36_spill]]  ;;  %s690_s8 = int_to_ptr.vmem [resolvable:$true] %s689_s8 }
  0x25   : > { %p2107_p11 = pneg %p2671_p10  ;;  %s3069_s17 = sld [smem:[#allocation34_spill]] }
  0x26   : > { %s2472_s29 = smov [#allocation9]   ;;  %s2473_s30 = smov [#allocation3]  }
  0x27   : > { %p2685_p12 = pnand %p2127_p9, %p2107_p11  ;;  %s716_s1 = sshll.u32 %s2472_s29, 4  ;;  %s717_s1 = int_to_ptr.vmem [resolvable:$true] %s716_s1 }
  0x28   : > { %s674_s24 = sshll.u32 %s2473_s30, 4  ;;  %s2474_s5 = smov [#allocation8]   ;;  %s675_s24 = int_to_ptr.vmem [resolvable:$true] %s674_s24 }
  0x29   : > { %s687_s3 = sshll.u32 %s3066_s19, 4  ;;  %s704_s0 = sshll.u32 %s2474_s5, 4  ;;  %s688_s3 = int_to_ptr.hbm [resolvable:$true] %s687_s3  ;;  %s705_s0 = int_to_ptr.vmem [resolvable:$true] %s704_s0 }
  0x2a   : > { %s714_s26 = sshll.u32 %s3067_s22, 4  ;;  %s702_s22 = sshll.u32 %s3019_s21, 4  ;;  %s715_s26 = int_to_ptr.hbm [resolvable:$true] %s714_s26  ;;  %s703_s22 = int_to_ptr.hbm [resolvable:$true] %s702_s22 }
  0x2b   : > { %s672_s19 = sshll.u32 %s3069_s17, 4  ;;  %s673_s19 = int_to_ptr.hbm [resolvable:$true] %s672_s19 }
  0x2c   : > { %2113 = dma.hbm_to_vmem [thread:$0]  (!%p2685_p12), %s688_s3, 16, %s690_s8, [#allocation7]  }
  0x2d   : > { %2119 = dma.hbm_to_vmem [thread:$0]  (!%p2685_p12), %s715_s26, 16, %s717_s1, [#allocation10]  }
  0x2e   : > { %2110 = dma.hbm_to_vmem [thread:$0]  (!%p2685_p12), %s673_s19, 16, %s675_s24, [#allocation4]  }
  0x2f   : > { %s726_s3 = sshll.u32 %s3021_s23, 4  ;;  %s2475_s26 = smov [#allocation11]   ;;  %s727_s3 = int_to_ptr.hbm [resolvable:$true] %s726_s3 }
  0x30   : > { %2116 = dma.hbm_to_vmem [thread:$0]  (!%p2685_p12), %s703_s22, 16, %s705_s0, [#allocation7]  }
  0x31   : > { %s728_s8 = sshll.u32 %s2475_s26, 4  ;;  %762 = sbr.rel (%p2671_p10) target bundleno = 3270 (0xcc6), region = 116  ;;  %s729_s8 = int_to_ptr.vmem [resolvable:$true] %s728_s8 }
  0x32   : > { %2122 = dma.hbm_to_vmem [thread:$0]  (!%p2685_p12), %s727_s3, 16, %s729_s8, [#allocation10]  }
  0x36   : > { %2440 = dma.done.wait (%p2127_p9), [#allocation4], 16  }
  0x37   : > { %2442 = vsyncadd (%p2127_p9), [#allocation4], 4294967280 }
  0x38   : > { %2444 = dma.done.wait (%p2127_p9), [#allocation7], 32  }
  0x39   : > { %2446 = vsyncadd (%p2127_p9), [#allocation7], 4294967264 }
  0x3a   : > { %2448 = dma.done.wait (%p2127_p9), [#allocation10], 32  }
  0x3b   : > { %2450 = vsyncadd (%p2127_p9), [#allocation10], 4294967264  ;;  %p862_p13 = scmp.lt.s32.totalorder %s2643_s7, 1  ;;  %s3070_s30 = sld [smem:[#allocation23_spill]]  ;;  %vm903_vm0 = vcmask 261120   ;;  %vm930_vm1 = vcmask 64512  }
  0x3c   : > { %s3071_s6 = sld [smem:[#allocation27_spill]]  ;;  %s2476_s8 = smov 104   ;;  %vm969_vm2 = vcmask 1043456   ;;  %vm1049_vm3 = vcmask 130112   ;;  %vm1113_vm4 = vcmask 195712   ;;  %vm1177_vm5 = vcmask 261312  }
  0x3d   : > { %s2724_s17 = scalar_select %p862_p13, %s2643_s7, 1  ;;  %vm1354_vm10 = vcmask 130048   ;;  %vm1722_vm14 = vcmask 523264  }
  0x3e   : > { %s3073_s26 = sld [smem:[#allocation28_spill]]  ;;  %s2477_s22 = smov 120  }
  0x3f   : > { %s3032_s19 = sshll.u32 %s2724_s17, 3  ;;  %s3040_s24 = smov 96  }
  0x40   : > { %s3038_s9 = smov 88   ;;  %s2482_s1 = smov 112  }
  0x41   : > { %s865_s28 = scalar_lea.vmem %s3070_s30, %s3032_s19  ;;  %s3033_s30 = smov 80  }
  0x42   : > { %s3072_s27 = smov %s3071_s6  ;;  %v2069_v0 = vld [vmem:[%s3071_s6 + $0x8] sm:$0xff]  ;;  %v2738_v2 = vld [vmem:[%s865_s28] sm:$0xff]  ;;  %s3039_s28 = smov 72  }
  0x43   : > { %v2068_v1 = vld [vmem:[%s3072_s27] sm:$0xff]  ;;  %913 = vmatpush.bf16.msra.mxu0 %v2069_v0  ;;  %v882_v3 = vpack.c.bf16 %v2738_v2, %v2738_v2  ;;  %s3074_s0 = sld [smem:[#allocation26_spill]]  ;;  %s2483_s5 = smov 64  }
  0x44   : > { %v2191_v4 = vld [vmem:[%s3073_s26] ss:$0 sm:$0xff]  ;;  %s3075_s6 = sld [smem:[#allocation25_spill]]  ;;  %s2486_s3 = smov 48  }
  0x45   : > { %s3036_s26 = smov 8   ;;  %s3079_s10 = sld [smem:[#allocation33_spill]] }
  0x46   : > { %s3080_s19 = sld [smem:[#allocation31_spill]] }
  0x47   : > { %914 = vmatpush.bf16.msra.mxu0 %v2068_v1 }
  0x49   : > { %s873_s29 = scalar_lea.vmem %s3074_s0, %s2724_s17  ;;  %s2484_s0 = smov 40  }
  0x4a   : > { %1980 = vmatmul.msk.bf16.vlgmr.msra.gmra.mxu0 %vm903_vm0, %v882_v3  ;;  %v2192_v20 = vld [vmem:[%s873_s29] ss:$0 sm:$0xff]  ;;  %s2485_s29 = smov 56  }
  0x4b   : > { %v920_v21 = vld [vmem:[%s3075_s6] sm:$0xff]  ;;  %s3035_s6 = smov 16  }
  0x4c   : > { %v925_v22 = vadd.f32 %v2192_v20, %v920_v21 }
  0xc7   : > { %v916_v5 = vpop.f32.mrf.mxu0 }
  0xc8   : > { %v917_v6 = vadd.f32 %v2191_v4, %v916_v5 }
  0xca   : > { %v2746_v7 = vpack.c.bf16 %v917_v6, %v917_v6 }
  0xcc   : > { %1115 = vrot.lane.b32.xlu2 %v2746_v7, %s2476_s8  ;;  %987 = vrot.lane.b32.xlu1 %v2746_v7, %s2477_s22 }
  0xcd   : > { %928 = vrot.lane.b32.xlu0 %v2746_v7, %s3040_s24  ;;  %s3088_s24 = smov 24  }
  0xcf   : > { %v918_v8 = vpop.f32.mrf.mxu0 }
  0xd4   : > { %1053 = vrot.lane.b32.xlu2 %v2746_v7, %s3033_s30  ;;  %1117 = vrot.lane.b32.xlu1 %v2746_v7, %s3039_s28  ;;  %s3081_s28 = sld [smem:[#allocation32_spill]]  ;;  %s3087_s30 = smov 16  }
  0xd5   : > { %989 = vrot.lane.b32.xlu0 %v2746_v7, %s3038_s9 }
  0xdd   : > { %1051 = vrot.lane.b32.xlu0 %v2746_v7, %s2482_s1 }
 0x126   : > { %v1116_v9 = vpop.permute.xlu2 %1115 }
 0x12e   : > { %v1054_v10 = vpop.permute.xlu2 %1053 }
 0x12f   : > { %v1059_v11 = vsel %vm930_vm1, %v1054_v10, 0 }
 0x130   : > { %1068 = vmatpush.bf16.xpose.msrb.mxu0 %v1059_v11 }
 0x13e   : > { %v988_v12 = vpop.permute.xlu1 %987 }
 0x13f   : > { %v929_v13 = vpop.permute.xlu0 %928 }
 0x140   : > { %v935_v14 = vsel %vm930_vm1, %v929_v13, 0 }
 0x141   : > { %944 = vmatpush.bf16.xpose.msra.mxu1 %v935_v14 }
 0x146   : > { %v1118_v15 = vpop.permute.xlu1 %1117 }
 0x147   : > { %v990_v16 = vpop.permute.xlu0 %989  ;;  %v1123_v17 = vsel %vm930_vm1, %v1118_v15, 0 }
 0x148   : > { %1981 = vmatmul.msk.bf16.vlgmr.msra.gmra.mxu1 %vm930_vm1, %v2746_v7  ;;  %v995_v18 = vsel %vm930_vm1, %v990_v16, 0 }
 0x149   : > { %1004 = vmatpush.bf16.xpose.msra.mxu3 %v995_v18 }
 0x14f   : > { %v1052_v19 = vpop.permute.xlu0 %1051 }
 0x150   : > { %1983 = vmatmul.msk.bf16.vlgmr.msra.gmra.mxu3 %vm930_vm1, %v988_v12  ;;  %1985 = vmatmul.msk.bf16.vlgmr.msrb.gmra.mxu0 %vm930_vm1, %v1052_v19 }
 0x151   : > { %1132 = vmatpush.bf16.xpose.msrb.mxu3 %v1123_v17 }
 0x160   : > { %1987 = vmatmul.msk.bf16.vlgmr.msrb.gmra.mxu3 %vm930_vm1, %v1116_v9 }
 0x1c5   : > { %v946_v23 = vpop.f32.mrf.mxu1 }
 0x1c6   : > { %v950_v24 = vmul.f32 0.35355338, %v946_v23 }
 0x1c8   : > { %v951_v25 = vadd.f32 %v950_v24, %v925_v22 }
 0x1ca   : > { %v952_v26 = vsel %vm930_vm1, %v951_v25, -inf }
 0x1cb   : > { %953 = vmax.xlane.f32.xlu1 %v952_v26 }
 0x1cd   : > { %v948_v27 = vpop.f32.mrf.mxu1  ;;  %v1070_v28 = vpop.f32.mrf.mxu0 }
 0x1ce   : > { %v1074_v33 = vmul.f32 0.35355338, %v1070_v28 }
 0x1d0   : > { %v1075_v36 = vadd.f32 %v1074_v33, %v925_v22 }
 0x1d2   : > { %v1076_v37 = vsel %vm930_vm1, %v1075_v36, -inf }
 0x1d3   : > { %v1006_v29 = vpop.f32.mrf.mxu3 }
 0x1d4   : > { %v1010_v30 = vmul.f32 0.35355338, %v1006_v29 }
 0x1d5   : > { %v1072_v31 = vpop.f32.mrf.mxu0 }
 0x1d6   : > { %v1011_v32 = vadd.f32 %v1010_v30, %v925_v22 }
 0x1d8   : > { %v1012_v34 = vsel %vm930_vm1, %v1011_v32, -inf }
 0x1d9   : > { %1013 = vmax.xlane.f32.xlu2 %v1012_v34 }
 0x1db   : > { %v1008_v35 = vpop.f32.mrf.mxu3 }
 0x1e1   : > { %1077 = vmax.xlane.f32.xlu2 %v1076_v37 }
 0x1e3   : > { %v1134_v38 = vpop.f32.mrf.mxu3 }
 0x1e4   : > { %v1138_v39 = vmul.f32 0.35355338, %v1134_v38 }
 0x1e6   : > { %v1139_v40 = vadd.f32 %v1138_v39, %v925_v22 }
 0x1e8   : > { %v1140_v41 = vsel %vm930_vm1, %v1139_v40, -inf }
 0x1e9   : > { %1141 = vmax.xlane.f32.xlu0 %v1140_v41 }
 0x1eb   : > { %v1136_v42 = vpop.f32.mrf.mxu3 }
 0x1f9   : > { %964 = vrot.lane.b32.xlu2 %v2746_v7, %s2483_s5  ;;  %s3034_s5 = smov 24  }
 0x201   : > { %1152 = vrot.lane.b32.xlu2 %v2746_v7, %s2484_s0  ;;  %s3077_s0 = sld [smem:[#allocation30_spill]] }
 0x207   : > { %v2193_v39 = vld [vmem:[%s3077_s0] ss:$0 sm:$0xff] }
 0x23e   : > { %v954_v43 = vpop.xlane.xlu1 %953 }
 0x23f   : > { %v955_v44 = vsub.f32 %v951_v25, %v954_v43 }
 0x241   : > { %v956_v45 = vmul.f32 1.442695, %v955_v44 }
 0x243   : > { %2205 = vpow2.f32 %v956_v45  ;;  %v2490_v45 = vmov 32.0  }
 0x249   : > { %v2206_v46 = vpop.eup %2205 }
 0x24a   : > { %v958_v47 = vsel %vm930_vm1, %v2206_v46, 0.0 }
 0x24b   : > { %959 = vadd.xlane.f32.xlu1 %v958_v47 }
 0x24c   : > { %v1014_v48 = vpop.xlane.xlu2 %1013 }
 0x24d   : > { %v1015_v51 = vsub.f32 %v1011_v32, %v1014_v48 }
 0x24f   : > { %v1016_v53 = vmul.f32 1.442695, %v1015_v51 }
 0x254   : > { %v1078_v49 = vpop.xlane.xlu2 %1077 }
 0x255   : > { %v1079_v50 = vsub.f32 %v1075_v36, %v1078_v49 }
 0x257   : > { %v1080_v52 = vmul.f32 1.442695, %v1079_v50 }
 0x259   : > { %2207 = vpow2.f32 %v1080_v52 }
 0x25a   : > { %2209 = vpow2.f32 %v1016_v53 }
 0x25c   : > { %v965_v54 = vpop.permute.xlu2 %964  ;;  %v1142_v55 = vpop.xlane.xlu0 %1141 }
 0x25d   : > { %v971_v56 = vsel %vm969_vm2, %v965_v54, 0  ;;  %v1143_v58 = vsub.f32 %v1139_v40, %v1142_v55 }
 0x25e   : > { %980 = vmatpush.bf16.msra.mxu2 %v971_v56 }
 0x25f   : > { %v2208_v57 = vpop.eup %2207  ;;  %v1144_v60 = vmul.f32 1.442695, %v1143_v58 }
 0x260   : > { %v1082_v59 = vsel %vm930_vm1, %v2208_v57, 0.0  ;;  %v2210_v61 = vpop.eup %2209 }
 0x261   : > { %1083 = vadd.xlane.f32.xlu0 %v1082_v59  ;;  %2211 = vpow2.f32 %v1144_v60  ;;  %v1018_v62 = vsel %vm930_vm1, %v2210_v61, 0.0 }
 0x264   : > { %1024 = vrot.lane.b32.xlu1 %v2746_v7, %s2485_s29  ;;  %v1153_v8 = vpop.permute.xlu2 %1152  ;;  %s2067_s29 = sshll.u32 %s2724_s17, 4 }
 0x265   : > { %v1158_v11 = vsel %vm969_vm2, %v1153_v8, 0 }
 0x267   : > { %v2212_v63 = vpop.eup %2211 }
 0x268   : > { %v1146_v0 = vsel %vm930_vm1, %v2212_v63, 0.0 }
 0x269   : > { %1019 = vadd.xlane.f32.xlu0 %v1018_v62  ;;  %v2072_v62 = vld [vmem:[%s3079_s10] sm:$0xff] }
 0x271   : > { %1147 = vadd.xlane.f32.xlu0 %v1146_v0 }
 0x285   : > { %1088 = vrot.lane.b32.xlu0 %v2746_v7, %s2486_s3  ;;  %s3076_s3 = sld [smem:[#allocation29_spill]] }
 0x28b   : > { %v2071_v32 = vld [vmem:[%s3076_s3 + $0x8] sm:$0xff]  ;;  %v2070_v33 = vld [vmem:[%s3076_s3] sm:$0xff] }
 0x28c   : > { %1210 = vmatpush.bf16.msra.mxu0 %v2071_v32 }
 0x290   : > { %1211 = vmatpush.bf16.msra.mxu0 %v2070_v33 }
 0x2be   : > { %v960_v1 = vpop.xlane.xlu1 %959 }
 0x2bf   : > { %2213 = vrcp.f32 %v960_v1 }
 0x2c5   : > { %v2214_v3 = vpop.eup %2213 }
 0x2c6   : > { %v962_v4 = vmul.f32 %v2214_v3, %v2206_v46  ;;  %v2075_v46 = vld [vmem:[%s3010_s12 + $0x8] sm:$0xff]  ;;  %v2196_v3 = vld [vmem:[%s3011_s13] ss:$0 sm:$0xff] }
 0x2c7   : > { %1324 = vmatpush.bf16.msra.mxu3 %v2075_v46 }
 0x2c8   : > { %v963_v5 = vpack.c.bf16 %v962_v4, %v962_v4 }
 0x2ca   : > { %1982 = vmatmul.msk.bf16.vlgmr.msra.gmra.mxu2 %vm930_vm1, %v963_v5 }
 0x2d4   : > { %v1084_v6 = vpop.xlane.xlu0 %1083 }
 0x2d6   : > { %v1025_v9 = vpop.permute.xlu1 %1024 }
 0x2d7   : > { %v1030_v10 = vsel %vm969_vm2, %v1025_v9, 0 }
 0x2d8   : > { %1039 = vmatpush.bf16.msrb.mxu2 %v1030_v10 }
 0x2dc   : > { %1167 = vmatpush.bf16.msra.mxu2 %v1158_v11  ;;  %v1020_v12 = vpop.xlane.xlu0 %1019 }
 0x2dd   : > { %2215 = vrcp.f32 %v1020_v12 }
 0x2e3   : > { %v2216_v13 = vpop.eup %2215 }
 0x2e4   : > { %v1022_v7 = vmul.f32 %v2216_v13, %v2210_v61  ;;  %v1148_v14 = vpop.xlane.xlu0 %1147  ;;  %v2073_v61 = vld [vmem:[%s3079_s10 + $0x8] sm:$0xff] }
 0x2e5   : > { %2217 = vrcp.f32 %v1148_v14 }
 0x2e6   : > { %v1023_v15 = vpack.c.bf16 %v1022_v7, %v1022_v7  ;;  %2219 = vrcp.f32 %v1084_v6 }
 0x2e7   : > { %2221 = vrcp.f32 %v2490_v45 }
 0x2e8   : > { %1984 = vmatmul.msk.bf16.vlgmr.msrb.gmra.mxu2 %vm930_vm1, %v1023_v15 }
 0x2eb   : > { %v2218_v16 = vpop.eup %2217 }
 0x2ec   : > { %v1150_v17 = vmul.f32 %v2218_v16, %v2212_v63  ;;  %v2220_v18 = vpop.eup %2219  ;;  %v2194_v16 = vld [vmem:[%s3080_s19] ss:$0 sm:$0xff]  ;;  %s3086_s19 = smov 8  }
 0x2ed   : > { %v1086_v19 = vmul.f32 %v2220_v18, %v2208_v57  ;;  %v2222_v49 = vpop.eup %2221  ;;  %v2195_v18 = vld [vmem:[%s3081_s28] ss:$0 sm:$0xff]  ;;  %s2084_s28 = sshll.u32 %s2643_s7, 5  ;;  %s2415_s7 = scalar_lea.hbm %s3023_s25, 64 }
 0x2ee   : > { %v1151_v20 = vpack.c.bf16 %v1150_v17, %v1150_v17  ;;  %v1224_v51 = vmul.f32 32.0, %v2222_v49  ;;  %vm1228_vm6 = vweird.f32 %v2222_v49 }
 0x2ef   : > { %v1087_v23 = vpack.c.bf16 %v1086_v19, %v1086_v19 }
 0x2f0   : > { %v1225_v52 = vsub.f32 1.0, %v1224_v51 }
 0x2f2   : > { %v1226_v53 = vmul.f32 %v2222_v49, %v1225_v52 }
 0x2f4   : > { %v1227_v54 = vadd.f32 %v2222_v49, %v1226_v53 }
 0x2f6   : > { %v2828_v55 = vsel %vm1228_vm6, %v2222_v49, %v1227_v54 }
 0x2f7   : > { %v1089_v21 = vpop.permute.xlu0 %1088 }
 0x2f8   : > { %1988 = vmatmul.msk.bf16.vlgmr.msra.gmra.mxu2 %vm930_vm1, %v1151_v20  ;;  %v1094_v22 = vsel %vm969_vm2, %v1089_v21, 0 }
 0x2f9   : > { %1103 = vmatpush.bf16.msrb.mxu1 %v1094_v22 }
 0x2fc   : > { %1986 = vmatmul.msk.bf16.vlgmr.msrb.gmra.mxu1 %vm930_vm1, %v1087_v23 }
 0x2fd   : > { %1287 = vmatpush.bf16.msra.mxu1 %v2073_v61 }
 0x301   : > { %1288 = vmatpush.bf16.msra.mxu1 %v2072_v62 }
 0x34d   : > { %v982_v24 = vpop.f32.mrf.mxu2 }
 0x34e   : > { %986 = vst.msk [vmem:[#allocation2] sm:$0xff] %vm930_vm1, %v982_v24 }
 0x355   : > { %v984_v25 = vpop.f32.mrf.mxu2 }
 0x356   : > { %v2197_v25 = vld [vmem:[%s3009_s11] ss:$0 sm:$0xff] }
 0x36b   : > { %v1041_v26 = vpop.f32.mrf.mxu2 }
 0x36c   : > { %1046 = vrot.lane.b32.xlu1 %v1041_v26, %s3036_s26  ;;  %s3078_s26 = sld [smem:[#allocation24_spill]] }
 0x372   : > { %s870_s9 = scalar_lea.vmem %s3078_s26, %s2067_s29  ;;  %s3085_s29 = smov 80  }
 0x373   : > { %v1043_v27 = vpop.f32.mrf.mxu2  ;;  %v880_v47 = vld [vmem:[%s870_s9] sm:$0xff]  ;;  %v881_v48 = vld [vmem:[%s870_s9 + $0x8] sm:$0xff] }
 0x374   : > { %v1294_v50 = vpack.c.bf16 %v881_v48, %v880_v47 }
 0x379   : > { %v1105_v28 = vpop.f32.mrf.mxu1 }
 0x37a   : > { %1110 = vrot.lane.b32.xlu2 %v1105_v28, %s3035_s6  ;;  %s859_s6 = sand.u32 1, %s2461_s2  }
 0x37b   : > { %v1169_v29 = vpop.f32.mrf.mxu2 }
 0x37c   : > { %1174 = vrot.lane.b32.xlu1 %v1169_v29, %s3034_s5  ;;  %s1967_s5 = sshll.u32 %s859_s6, 5 }
 0x37d   : > { %s2893_s0 = scalar_lea.vmem [#allocation12], %s1967_s5  ;;  %s1778_s5 = scalar_lea.sflag [#allocation5], %s859_s6 }
 0x381   : > { %v1107_v30 = vpop.f32.mrf.mxu1 }
 0x383   : > { %v1171_v31 = vpop.f32.mrf.mxu2 }
 0x3d4   : > { %v1111_v35 = vpop.permute.xlu2 %1110 }
 0x3de   : > { %v1047_v34 = vpop.permute.xlu1 %1046 }
 0x3df   : > { %1050 = vst.msk [vmem:[#allocation2] sm:$0xff] %vm1049_vm3, %v1047_v34 }
 0x3e0   : > { %1114 = vst.msk [vmem:[#allocation2] sm:$0xff] %vm1113_vm4, %v1111_v35 }
 0x3ee   : > { %v1175_v36 = vpop.permute.xlu1 %1174 }
 0x3ef   : > { %1178 = vst.msk [vmem:[#allocation2] sm:$0xff] %vm1177_vm5, %v1175_v36 }
 0x3f6   : > { %v1179_v37 = vld [vmem:[#allocation2] sm:$0xff] }
 0x3f7   : > { %v1180_v38 = vpack.c.bf16 %v1179_v37, %v1179_v37 }
 0x3f9   : > { %1997 = vmatmul.msk.bf16.vlgmr.msra.gmra.mxu0 %vm903_vm0, %v1180_v38 }
 0x476   : > { %v1213_v40 = vpop.f32.mrf.mxu0 }
 0x477   : > { %v1214_v41 = vadd.f32 %v2193_v39, %v1213_v40 }
 0x479   : > { %v1217_v42 = vadd.f32 %v1214_v41, %v2738_v2  ;;  %v2074_v2 = vld [vmem:[%s3010_s12] sm:$0xff] }
 0x47a   : > { %1325 = vmatpush.bf16.msra.mxu3 %v2074_v2 }
 0x47b   : > { %v1220_v43 = vsel %vm903_vm0, %v1217_v42, 0.0 }
 0x47c   : > { %1221 = vadd.xlane.f32.xlu2 %v1220_v43 }
 0x47d   : > { %2015 = vmatmul.msk.bf16.vlgmr.msra.gmra.mxu3 %vm903_vm0, %v1294_v50 }
 0x47e   : > { %v1215_v44 = vpop.f32.mrf.mxu0 }
 0x4ef   : > { %v1222_v56 = vpop.xlane.xlu2 %1221 }
 0x4f0   : > { %v1230_v57 = vmul.f32 %v2828_v55, %v1222_v56 }
 0x4f2   : > { %v1231_v58 = vsub.f32 %v1217_v42, %v1230_v57 }
 0x4f4   : > { %v1232_v59 = vmul.f32 %v1231_v58, %v1231_v58 }
 0x4f6   : > { %v1233_v60 = vsel %vm903_vm0, %v1232_v59, 0.0 }
 0x4f7   : > { %1234 = vadd.xlane.f32.xlu1 %v1233_v60 }
 0x500   : > { %v1327_v63 = vpop.f32.mrf.mxu3 }
 0x501   : > { %v1328_v5 = vadd.f32 %v2196_v3, %v1327_v63 }
 0x508   : > { %v1329_v6 = vpop.f32.mrf.mxu3 }
 0x509   : > { %v1330_v8 = vadd.f32 %v2196_v3, %v1329_v6 }
 0x50b   : > { %v2842_v9 = vpack.c.bf16 %v1330_v8, %v1328_v5 }
 0x50d   : > { %1392 = vrot.lane.b32.xlu0 %v2842_v9, %s2477_s22  ;;  %v1338_v12 = vsel %vm930_vm1, %v2842_v9, 0 }
 0x50e   : > { %1347 = vmatpush.bf16.xpose.msrb.mxu2 %v1338_v12 }
 0x515   : > { %1454 = vrot.lane.b32.xlu0 %v2842_v9, %s2482_s1 }
 0x56a   : > { %v1235_v0 = vpop.xlane.xlu1 %1234 }
 0x56b   : > { %v1236_v1 = vmul.f32 %v1235_v0, %v2828_v55 }
 0x56d   : > { %v1237_v4 = vadd.f32 1e-05, %v1236_v1 }
 0x56f   : > { %2223 = vrsqrt.f32 %v1237_v4  ;;  %vm1244_vm8 = vweird.f32 %v1237_v4 }
 0x575   : > { %v2224_v10 = vpop.eup %2223 }
 0x576   : > { %v1239_v11 = vmul.f32 %v2224_v10, %v1237_v4  ;;  %vm1245_vm7 = vweird.f32 %v2224_v10 }
 0x577   : > { %vm1246_vm9 = vmor %vm1244_vm8, %vm1245_vm7 }
 0x578   : > { %v1240_v13 = vmul.f32 %v2224_v10, %v1239_v11 }
 0x57a   : > { %v1241_v7 = vmul.f32 0.5, %v1240_v13 }
 0x57c   : > { %v1242_v14 = vsub.f32 1.5, %v1241_v7 }
 0x57e   : > { %v1243_v15 = vmul.f32 %v2224_v10, %v1242_v14 }
 0x57f   : > { %v1393_v23 = vpop.permute.xlu0 %1392 }
 0x580   : > { %v1247_v17 = vsel %vm1246_vm9, %v2224_v10, %v1243_v15  ;;  %v1398_v24 = vsel %vm930_vm1, %v1393_v23, 0 }
 0x581   : > { %v1248_v19 = vmul.f32 %v1247_v17, %v1231_v58  ;;  %1407 = vmatpush.bf16.xpose.msrb.mxu1 %v1398_v24 }
 0x583   : > { %v1252_v20 = vmul.f32 %v2194_v16, %v1248_v19 }
 0x585   : > { %v2856_v21 = vadd.f32 %v2195_v18, %v1252_v20 }
 0x587   : > { %v1257_v22 = vpack.c.bf16 %v2856_v21, %v2856_v21  ;;  %v1455_v30 = vpop.permute.xlu0 %1454 }
 0x588   : > { %v1460_v31 = vsel %vm930_vm1, %v1455_v30, 0 }
 0x589   : > { %2006 = vmatmul.msk.bf16.vlgmr.msra.gmra.mxu1 %vm903_vm0, %v1257_v22  ;;  %1469 = vmatpush.bf16.xpose.msra.mxu2 %v1460_v31 }
 0x606   : > { %v1290_v26 = vpop.f32.mrf.mxu1 }
 0x607   : > { %v1291_v27 = vadd.f32 %v2197_v25, %v1290_v26 }
 0x609   : > { %v1332_v28 = vpack.c.bf16 %v1291_v27, %v1291_v27 }
 0x60b   : > { %1514 = vrot.lane.b32.xlu2 %v1332_v28, %s2476_s8  ;;  %1390 = vrot.lane.b32.xlu0 %v1332_v28, %s2477_s22  ;;  %s3083_s22 = smov 72  }
 0x60c   : > { %2016 = vmatmul.msk.bf16.vlgmr.msrb.gmra.mxu2 %vm930_vm1, %v1332_v28 }
 0x60e   : > { %v1292_v29 = vpop.f32.mrf.mxu1 }
 0x613   : > { %1516 = vrot.lane.b32.xlu0 %v2842_v9, %s2476_s8  ;;  %s3082_s8 = smov 96  }
 0x61b   : > { %1452 = vrot.lane.b32.xlu0 %v1332_v28, %s2482_s1  ;;  %s3084_s1 = smov 88  }
 0x665   : > { %v1515_v35 = vpop.permute.xlu2 %1514 }
 0x67d   : > { %v1391_v32 = vpop.permute.xlu0 %1390 }
 0x67e   : > { %2018 = vmatmul.msk.bf16.vlgmr.msrb.gmra.mxu1 %vm930_vm1, %v1391_v32 }
 0x685   : > { %v1517_v33 = vpop.permute.xlu0 %1516 }
 0x686   : > { %v1522_v34 = vsel %vm930_vm1, %v1517_v33, 0 }
 0x687   : > { %1531 = vmatpush.bf16.xpose.msra.mxu1 %v1522_v34 }
 0x68d   : > { %v1453_v36 = vpop.permute.xlu0 %1452 }
 0x68e   : > { %2021 = vmatmul.msk.bf16.vlgmr.msra.gmra.mxu2 %vm930_vm1, %v1453_v36  ;;  %2024 = vmatmul.msk.bf16.vlgmr.msra.gmra.mxu1 %vm930_vm1, %v1515_v35 }
 0x68f   : > { %v1349_v37 = vpop.f32.mrf.mxu2 }
 0x690   : > { %v1353_v38 = vmul.f32 0.35355338, %v1349_v37 }
 0x692   : > { %v1355_v39 = vsel %vm1354_vm10, %v1353_v38, -inf }
 0x693   : > { %1356 = vmax.xlane.f32.xlu0 %v1355_v39  ;;  %v2077_v39 = vld [vmem:[%s3012_s14 + $0x8] sm:$0xff] }
 0x694   : > { %1607 = vmatpush.bf16.msrb.mxu2 %v2077_v39 }
 0x697   : > { %v1351_v40 = vpop.f32.mrf.mxu2 }
 0x6a7   : > { %1369 = vrot.lane.b32.xlu0 %v2842_v9, %s3082_s8  ;;  %s1792_s8 = scalar_lea.hbm %s3023_s25, %s2084_s28 }
 0x6af   : > { %1552 = vrot.lane.b32.xlu0 %v2842_v9, %s3083_s22  ;;  %s1793_s22 = sshll.u32 %s2893_s0, 4  ;;  %s1794_s22 = int_to_ptr.vmem [resolvable:$true] %s1793_s22 }
 0x6fb   : > { %v1409_v41 = vpop.f32.mrf.mxu1 }
 0x6fc   : > { %v1413_v42 = vmul.f32 0.35355338, %v1409_v41  ;;  %v2076_v41 = vld [vmem:[%s3012_s14] sm:$0xff] }
 0x6fd   : > { %1608 = vmatpush.bf16.msrb.mxu2 %v2076_v41 }
 0x6fe   : > { %v1414_v43 = vsel %vm1354_vm10, %v1413_v42, -inf }
 0x6ff   : > { %1415 = vmax.xlane.f32.xlu1 %v1414_v43 }
 0x703   : > { %v1411_v44 = vpop.f32.mrf.mxu1 }
 0x706   : > { %v1357_v46 = vpop.xlane.xlu0 %1356 }
 0x707   : > { %v1358_v48 = vsub.f32 %v1353_v38, %v1357_v46  ;;  %v2198_v46 = vld [vmem:[%s3013_s15] ss:$0 sm:$0xff] }
 0x709   : > { %v1359_v51 = vmul.f32 1.442695, %v1358_v48 }
 0x70b   : > { %v1533_v45 = vpop.f32.mrf.mxu1  ;;  %2225 = vpow2.f32 %v1359_v51 }
 0x70c   : > { %v1537_v52 = vmul.f32 0.35355338, %v1533_v45 }
 0x70e   : > { %v1538_v56 = vsel %vm1354_vm10, %v1537_v52, -inf }
 0x711   : > { %v1471_v2 = vpop.f32.mrf.mxu2  ;;  %v2226_v57 = vpop.eup %2225 }
 0x712   : > { %v1475_v47 = vmul.f32 0.35355338, %v1471_v2  ;;  %v1361_v58 = vsel %vm1354_vm10, %v2226_v57, 0.0 }
 0x713   : > { %v1535_v49 = vpop.f32.mrf.mxu1 }
 0x714   : > { %v1476_v50 = vsel %vm1354_vm10, %v1475_v47, -inf }
 0x715   : > { %1477 = vmax.xlane.f32.xlu1 %v1476_v50 }
 0x719   : > { %v1370_v53 = vpop.permute.xlu0 %1369  ;;  %v1473_v54 = vpop.f32.mrf.mxu2 }
 0x71a   : > { %1382 = vmatpush.bf16.msrb.mxu0 %v1370_v53 }
 0x71d   : > { %1539 = vmax.xlane.f32.xlu1 %v1538_v56 }
 0x721   : > { %v1553_v17 = vpop.permute.xlu0 %1552 }
 0x725   : > { %1362 = vadd.xlane.f32.xlu1 %v1361_v58  ;;  %v2083_v58 = vld [vmem:[%s3018_s20 + $0x18] sm:$0xff] }
 0x726   : > { %1730 = vmatpush.bf16.msrb.mxu1 %v2083_v58 }
 0x73e   : > { %1428 = vrot.lane.b32.xlu1 %v2842_v9, %s3084_s1  ;;  %s1795_s1 = sshll.u32 %s1792_s8, 4  ;;  %s1796_s1 = int_to_ptr.hbm [resolvable:$true] %s1795_s1 }
 0x772   : > { %v1416_v59 = vpop.xlane.xlu1 %1415 }
 0x773   : > { %v1417_v60 = vsub.f32 %v1413_v42, %v1416_v59 }
 0x775   : > { %v1418_v61 = vmul.f32 1.442695, %v1417_v60 }
 0x777   : > { %2227 = vpow2.f32 %v1418_v61  ;;  %v2082_v61 = vld [vmem:[%s3018_s20 + $0x10] sm:$0xff] }
 0x778   : > { %1731 = vmatpush.bf16.msrb.mxu1 %v2082_v61 }
 0x77d   : > { %v2228_v62 = vpop.eup %2227 }
 0x77e   : > { %v1420_v63 = vsel %vm1354_vm10, %v2228_v62, 0.0 }
 0x77f   : > { %1421 = vadd.xlane.f32.xlu2 %v1420_v63 }
 0x788   : > { %v1478_v0 = vpop.xlane.xlu1 %1477 }
 0x789   : > { %v1479_v1 = vsub.f32 %v1475_v47, %v1478_v0 }
 0x78b   : > { %v1480_v3 = vmul.f32 1.442695, %v1479_v1 }
 0x78d   : > { %2229 = vpow2.f32 %v1480_v3 }
 0x790   : > { %v1540_v4 = vpop.xlane.xlu1 %1539 }
 0x791   : > { %v1541_v5 = vsub.f32 %v1537_v52, %v1540_v4 }
 0x793   : > { %v2230_v6 = vpop.eup %2229  ;;  %v1542_v8 = vmul.f32 1.442695, %v1541_v5 }
 0x794   : > { %v1482_v10 = vsel %vm1354_vm10, %v2230_v6, 0.0 }
 0x795   : > { %2231 = vpow2.f32 %v1542_v8  ;;  %1483 = vadd.xlane.f32.xlu2 %v1482_v10  ;;  %v2200_v10 = vld [vmem:[#allocation3] ss:$0 sm:$0xff] }
 0x798   : > { %v1363_v11 = vpop.xlane.xlu1 %1362 }
 0x799   : > { %2233 = vrcp.f32 %v1363_v11 }
 0x79b   : > { %v2232_v12 = vpop.eup %2231 }
 0x79c   : > { %v1544_v13 = vsel %vm1354_vm10, %v2232_v12, 0.0 }
 0x79d   : > { %1545 = vadd.xlane.f32.xlu1 %v1544_v13 }
 0x79f   : > { %v2234_v7 = vpop.eup %2233 }
 0x7a0   : > { %v1365_v14 = vmul.f32 %v2234_v7, %v2226_v57  ;;  %v2079_v57 = vld [vmem:[%s3016_s18 + $0x8] sm:$0xff] }
 0x7a2   : > { %1366 = vst.msk [vmem:[%s2893_s0] sm:$0xff] %vm1354_vm10, %v1365_v14  ;;  %v1367_v15 = vpack.c.bf16 %v1365_v14, %v1365_v14  ;;  %v2081_v14 = vld [vmem:[%s3018_s20 + $0x8] sm:$0xff] }
 0x7a3   : > { %1732 = vmatpush.bf16.msrb.mxu1 %v2081_v14 }
 0x7a4   : > { %2017 = vmatmul.msk.bf16.vlgmr.msrb.gmra.mxu0 %vm1354_vm10, %v1367_v15  ;;  %v2080_v15 = vld [vmem:[%s3018_s20] sm:$0xff] }
 0x7a7   : > { %1733 = vmatpush.bf16.msrb.mxu1 %v2080_v15 }
 0x7ad   : > { %1490 = vrot.lane.b32.xlu2 %v2842_v9, %s3085_s29  ;;  %s2409_s29 = sshra.s32 %s1796_s1, 4  ;;  %s2410_s29 = int_to_ptr.hbm [resolvable:$true] %s2409_s29 }
 0x7ae   : > { %p2416_p3 = scmp.lt.s32.totalorder %s2410_s29, %s3023_s25 }
 0x7b0   : > { %v1429_v16 = vpop.permute.xlu1 %1428 }
 0x7b1   : > { %1441 = vmatpush.bf16.msrb.mxu3 %v1429_v16  ;;  %v2201_v16 = vld [vmem:[#allocation6] ss:$0 sm:$0xff] }
 0x7b5   : > { %1565 = vmatpush.bf16.msra.mxu3 %v1553_v17 }
 0x7f2   : > { %v1422_v18 = vpop.xlane.xlu2 %1421 }
 0x7f3   : > { %2235 = vrcp.f32 %v1422_v18 }
 0x7f9   : > { %v2236_v19 = vpop.eup %2235 }
 0x7fa   : > { %v1424_v20 = vmul.f32 %v2236_v19, %v2228_v62 }
 0x7fc   : > { %2019 = vst.msk [vmem:[%s2893_s0 + $0x8] sm:$0xff] %vm1354_vm10, %v1424_v20  ;;  %v1427_v22 = vpack.c.bf16 %v1424_v20, %v1424_v20 }
 0x7fe   : > { %2020 = vmatmul.msk.bf16.vlgmr.msrb.gmra.mxu3 %vm1354_vm10, %v1427_v22 }
 0x808   : > { %v1484_v23 = vpop.xlane.xlu2 %1483 }
 0x809   : > { %2237 = vrcp.f32 %v1484_v23  ;;  %v2202_v23 = vld [vmem:[#allocation8] ss:$0 sm:$0xff] }
 0x80f   : > { %v2238_v24 = vpop.eup %2237 }
 0x810   : > { %v1486_v25 = vmul.f32 %v2238_v24, %v2230_v6  ;;  %v1491_v9 = vpop.permute.xlu2 %1490  ;;  %v1546_v26 = vpop.xlane.xlu1 %1545  ;;  %v2199_v6 = vld [vmem:[%s3014_s16] ss:$0 sm:$0xff] }
 0x811   : > { %2239 = vrcp.f32 %v1546_v26  ;;  %1503 = vmatpush.bf16.msra.mxu0 %v1491_v9 }
 0x812   : > { %2022 = vst.msk [vmem:[%s2893_s0 + $0x10] sm:$0xff] %vm1354_vm10, %v1486_v25  ;;  %v1489_v27 = vpack.c.bf16 %v1486_v25, %v1486_v25 }
 0x814   : > { %2023 = vmatmul.msk.bf16.vlgmr.msra.gmra.mxu0 %vm1354_vm10, %v1489_v27 }
 0x815   : > { %1677 = vmatpush.bf16.msrb.mxu0 %v2079_v57 }
 0x817   : > { %v2240_v28 = vpop.eup %2239 }
 0x818   : > { %v1548_v29 = vmul.f32 %v2240_v28, %v2232_v12 }
 0x81a   : > { %2025 = vst.msk [vmem:[%s2893_s0 + $0x18] sm:$0xff] %vm1354_vm10, %v1548_v29  ;;  %v1551_v30 = vpack.c.bf16 %v1548_v29, %v1548_v29 }
 0x81c   : > { %2026 = vmatmul.msk.bf16.vlgmr.msra.gmra.mxu3 %vm1354_vm10, %v1551_v30 }
 0x821   : > { %v1384_v31 = vpop.f32.mrf.mxu0 }
 0x822   : > { %1388 = vst.msk [vmem:[#allocation2] sm:$0xff] %vm930_vm1, %v1384_v31 }
 0x829   : > { %v1386_v32 = vpop.f32.mrf.mxu0 }
 0x881   : > { %v1443_v33 = vpop.f32.mrf.mxu3 }
 0x882   : > { %1448 = vrot.lane.b32.xlu0 %v1443_v33, %s3086_s19 }
 0x889   : > { %v1445_v34 = vpop.f32.mrf.mxu3 }
 0x891   : > { %v1505_v35 = vpop.f32.mrf.mxu0 }
 0x892   : > { %1510 = vrot.lane.b32.xlu0 %v1505_v35, %s3087_s30  ;;  %s2411_s30 = scalar_lea.hbm %s2410_s29, 32 }
 0x893   : > { %p2412_p0 = scmp.ne.s32.totalorder %s2410_s29, %s2411_s30  ;;  %p2417_p4 = scmp.lt.s32.totalorder %s2415_s7, %s2411_s30 }
 0x895   : > { %p2413_p1 = pnand %p2412_p0, %p2660_p5  ;;  %p2418_p7 = por %p2417_p4, %p2416_p3 }
 0x897   : > { %p2414_p2 = pneg %p2413_p1 }
 0x899   : > { %v1507_v36 = vpop.f32.mrf.mxu0  ;;  %p2419_p8 = pnand %p2418_p7, %p2414_p2 }
 0x89f   : > { %v1567_v37 = vpop.f32.mrf.mxu3 }
 0x8a0   : > { %1572 = vrot.lane.b32.xlu0 %v1567_v37, %s3088_s24 }
 0x8a7   : > { %v1569_v38 = vpop.f32.mrf.mxu3 }
 0x8f4   : > { %v1449_v40 = vpop.permute.xlu0 %1448 }
 0x8f5   : > { %1451 = vst.msk [vmem:[#allocation2] sm:$0xff] %vm1049_vm3, %v1449_v40 }
 0x904   : > { %v1511_v42 = vpop.permute.xlu0 %1510 }
 0x905   : > { %1513 = vst.msk [vmem:[#allocation2] sm:$0xff] %vm1113_vm4, %v1511_v42 }
 0x912   : > { %v1573_v43 = vpop.permute.xlu0 %1572 }
 0x913   : > { %1575 = vst.msk [vmem:[#allocation2] sm:$0xff] %vm1177_vm5, %v1573_v43 }
 0x91a   : > { %v1576_v44 = vld [vmem:[#allocation2] sm:$0xff] }
 0x91b   : > { %v1577_v45 = vpack.c.bf16 %v1576_v44, %v1576_v44 }
 0x91d   : > { %2035 = vmatmul.msk.bf16.vlgmr.msrb.gmra.mxu2 %vm903_vm0, %v1577_v45 }
 0x9a0   : > { %v1610_v2 = vpop.f32.mrf.mxu2 }
 0x9a1   : > { %v1611_v47 = vadd.f32 %v2198_v46, %v1610_v2 }
 0x9a3   : > { %v1614_v48 = vadd.f32 %v1611_v47, %v2856_v21  ;;  %v2078_v21 = vld [vmem:[%s3016_s18] sm:$0xff] }
 0x9a4   : > { %1678 = vmatpush.bf16.msrb.mxu0 %v2078_v21 }
 0x9a5   : > { %v1617_v49 = vsel %vm903_vm0, %v1614_v48, 0.0 }
 0x9a6   : > { %1618 = vadd.xlane.f32.xlu2 %v1617_v49 }
 0x9a8   : > { %v1612_v50 = vpop.f32.mrf.mxu2 }
 0xa19   : > { %v1619_v51 = vpop.xlane.xlu2 %1618 }
 0xa1a   : > { %v1620_v52 = vmul.f32 %v1619_v51, %v2828_v55 }
 0xa1c   : > { %v1621_v53 = vsub.f32 %v1614_v48, %v1620_v52 }
 0xa1e   : > { %v1622_v54 = vmul.f32 %v1621_v53, %v1621_v53 }
 0xa20   : > { %v1623_v56 = vsel %vm903_vm0, %v1622_v54, 0.0 }
 0xa21   : > { %1624 = vadd.xlane.f32.xlu0 %v1623_v56 }
 0xa94   : > { %v1625_v59 = vpop.xlane.xlu0 %1624 }
 0xa95   : > { %v1626_v60 = vmul.f32 %v1625_v59, %v2828_v55 }
 0xa97   : > { %v1627_v62 = vadd.f32 1e-05, %v1626_v60 }
 0xa99   : > { %2241 = vrsqrt.f32 %v1627_v62  ;;  %vm1634_vm12 = vweird.f32 %v1627_v62 }
 0xa9f   : > { %v2242_v63 = vpop.eup %2241 }
 0xaa0   : > { %v1629_v0 = vmul.f32 %v2242_v63, %v1627_v62  ;;  %vm1635_vm11 = vweird.f32 %v2242_v63 }
 0xaa1   : > { %vm1636_vm13 = vmor %vm1634_vm12, %vm1635_vm11 }
 0xaa2   : > { %v1630_v1 = vmul.f32 %v2242_v63, %v1629_v0 }
 0xaa4   : > { %v1631_v3 = vmul.f32 0.5, %v1630_v1 }
 0xaa6   : > { %v1632_v4 = vsub.f32 1.5, %v1631_v3 }
 0xaa8   : > { %v1633_v5 = vmul.f32 %v2242_v63, %v1632_v4 }
 0xaaa   : > { %v1637_v8 = vsel %vm1636_vm13, %v2242_v63, %v1633_v5 }
 0xaab   : > { %v1638_v11 = vmul.f32 %v1637_v8, %v1621_v53 }
 0xaad   : > { %v1642_v12 = vmul.f32 %v2199_v6, %v1638_v11 }
 0xaaf   : > { %v1646_v13 = vadd.f32 %v2200_v10, %v1642_v12 }
 0xab1   : > { %v1647_v7 = vpack.c.bf16 %v1646_v13, %v1646_v13 }
 0xab3   : > { %2044 = vmatmul.msk.bf16.vlgmr.msrb.gmra.mxu0 %vm903_vm0, %v1647_v7 }
 0xb30   : > { %v1680_v17 = vpop.f32.mrf.mxu0 }
 0xb31   : > { %v1681_v18 = vadd.f32 %v2201_v16, %v1680_v17 }
 0xb33   : > { %v1684_v19 = vmax.f32 %v1681_v18, 0.0 }
 0xb35   : > { %v1685_v20 = vpack.c.bf16 %v1684_v19, %v1684_v19 }
 0xb37   : > { %2061 = vmatmul.msk.bf16.vlgmr.msrb.gmra.mxu1 %vm1722_vm14, %v1685_v20 }
 0xb38   : > { %v1682_v22 = vpop.f32.mrf.mxu0 }
 0xbb4   : > { %v1735_v24 = vpop.f32.mrf.mxu1 }
 0xbb5   : > { %v1736_v25 = vadd.f32 %v2202_v23, %v1735_v24 }
 0xbb7   : > { %v1739_v9 = vadd.f32 %v1736_v25, %v1646_v13 }
 0xbb9   : > { %v1742_v26 = vsel %vm903_vm0, %v1739_v9, 0.0 }
 0xbba   : > { %1743 = vadd.xlane.f32.xlu1 %v1742_v26 }
 0xbbc   : > { %v1737_v27 = vpop.f32.mrf.mxu1 }
 0xc2d   : > { %v1744_v28 = vpop.xlane.xlu1 %1743 }
 0xc2e   : > { %v1745_v29 = vmul.f32 %v1744_v28, %v2828_v55 }
 0xc30   : > { %v1746_v30 = vsub.f32 %v1739_v9, %v1745_v29 }
 0xc32   : > { %v1747_v31 = vmul.f32 %v1746_v30, %v1746_v30 }
 0xc34   : > { %v1748_v32 = vsel %vm903_vm0, %v1747_v31, 0.0 }
 0xc35   : > { %1749 = vadd.xlane.f32.xlu1 %v1748_v32 }
 0xc36   : > { %2422 = shalt.err (!%p2419_p8)
}
 0xc37   : > { %s2491_s6 = smov 128   ;;  %v2203_v42 = vld [vmem:[#allocation9] ss:$0 sm:$0xff]  ;;  %v2204_v44 = vld [vmem:[#allocation11] ss:$0 sm:$0xff]  ;;  %s3089_s10 = sshll.u32 %s2724_s17, 3 }
 0xc38   : > { %2105 = dma.vmem_to_hbm [thread:$0]  (%p2660_p5), %s1794_s22, 512, %s1796_s1, %s1778_s5, %s2491_s6, %s2491_s6, %s3086_s19  }
 0xc39   : > { %s3090_s0 = sld [smem:[#allocation37_spill]] }
 0xc3f   : > { %s877_s19 = scalar_lea.vmem %s3090_s0, %s3089_s10 }
 0xca8   : > { %v1750_v33 = vpop.xlane.xlu1 %1749 }
 0xca9   : > { %v1751_v34 = vmul.f32 %v1750_v33, %v2828_v55 }
 0xcab   : > { %v1752_v35 = vadd.f32 1e-05, %v1751_v34 }
 0xcad   : > { %2243 = vrsqrt.f32 %v1752_v35  ;;  %vm1759_vm1 = vweird.f32 %v1752_v35 }
 0xcb3   : > { %v2244_v36 = vpop.eup %2243 }
 0xcb4   : > { %v1754_v37 = vmul.f32 %v2244_v36, %v1752_v35  ;;  %vm1760_vm15 = vweird.f32 %v2244_v36 }
 0xcb5   : > { %vm1761_vm2 = vmor %vm1759_vm1, %vm1760_vm15 }
 0xcb6   : > { %v1755_v38 = vmul.f32 %v2244_v36, %v1754_v37 }
 0xcb8   : > { %v1756_v39 = vmul.f32 0.5, %v1755_v38 }
 0xcba   : > { %v1757_v40 = vsub.f32 1.5, %v1756_v39 }
 0xcbc   : > { %v1758_v41 = vmul.f32 %v2244_v36, %v1757_v40 }
 0xcbe   : > { %v1762_v43 = vsel %vm1761_vm2, %v2244_v36, %v1758_v41 }
 0xcbf   : > { %v1763_v45 = vmul.f32 %v1762_v43, %v1746_v30 }
 0xcc1   : > { %v1767_v46 = vmul.f32 %v2203_v42, %v1763_v45 }
 0xcc3   : > { %v1771_v55 = vadd.f32 %v2204_v44, %v1767_v46 }
 0xcc5   : > { %1772 = vst.msk [vmem:[%s877_s19] sm:$0xff] %vm903_vm0, %v1771_v55 }
 0xcc6 PF: > { %s3091_s28 = sld [smem:[#allocation19_spill]] }
 0xcc7   : > { %s3092_s26 = sld [smem:[#allocation17_spill]] }
 0xccc   : > { %p2137_p5 = scmp.ge.s32.totalorder %s3091_s28, 2 }
 0xccd   : > { %s1817_s22 = sand.u32 1, %s3092_s26  }
 0xcce   : > { %p2124_p9 = pnand %p2137_p5, %p2664_p6  ;;  %s1818_s1 = scalar_lea.sflag [#allocation5], %s1817_s22 }
 0xcd0   : > { %p2125_p10 = pneg %p2124_p9 }
 0xcd2   : > { %2452 = dma.done.wait (%p2125_p10), %s1818_s1, 512  }
 0xcd3   : > { %2454 = vsyncadd (%p2125_p10), %s1818_s1, 4294966784  ;;  %s3094_s30 = sld [smem:[#allocation20_spill]]  ;;  %s3097_s29 = smov %s2461_s2 }
 0xcd4   : > { %s3095_s17 = sld [smem:[#allocation18_spill]] }
 0xcd5   : > { %s3096_s6 = sld [smem:[#allocation21_spill]] }
 0xcd9   : > { %p39_p11 = scmp.ge.s32.totalorder %s3094_s30, 4  }
 0xcda   : > { %s3098_s2 = smov %s3095_s17 }
 0xcdb   :  { %41 = sbr.rel (!%p39_p11) target bundleno = 22 (0x16), region = 193 }
 0xce0   :  { %1824 = vsyncpa [#allocation4], 1 }
 0xce1   :  { %1826 = vsyncpa [#allocation4 + $0x1], 1 }
 0xce2   :  { %1827 = vsyncpa [#allocation7], 1 }
 0xce3   :  { %1828 = vsyncpa [#allocation10], 1 }
 0xce4   :  { %1829 = vsyncpa [#allocation5], 1 }
 0xce5   :  { %1831 = vsyncpa [#allocation5 + $0x1], 1 }

</bundles_post_ra>
